<compile_context>
chip_gen: v7x
topology: tpu7x:2x2x1
jax: 0.10.0
libtpu: 0.0.40
codegen_flags: <defaults>
</compile_context>

<pallas_src>
import functools

import jax
import jax.numpy as jnp
from jax.experimental import pallas as pl
from jax.experimental.pallas import tpu as pltpu

LANE = 128


def _round_up(x, m):
    return ((x + m - 1) // m) * m


def _fused_graphsage_kernel(a_ref, x_ref, w1_ref, b1_ref, w2_ref, b2_ref,
                            o_ref, h1_ref, *, tm):
    """Grid = (phase, row_tile); phase 0 = conv1+ReLU, phase 1 = conv2.

    a_ref   : (tm, N_P)       bf16 adjacency rows with 1/max(deg,1) pre-folded
    x_ref   : (N_P, FIN_P)    bf16 padded input features (all source nodes)
    w1_ref  : (2*FIN_P, H_P)  f32 stacked [W_self1; W_neigh1]
    w2_ref  : (2*H_P,  H_P)   f32 stacked [W_self2; W_neigh2]
    b*_ref  : (1, H_P)        f32 padded biases
    o_ref   : (tm, H_P)       f32 output row tile (written only in phase 1)
    h1_ref  : (N_P, H_P)      bf16 VMEM scratch holding the full layer-1 output
    """
    phase = pl.program_id(0)
    tile = pl.program_id(1)
    row0 = pl.multiple_of(tile * tm, tm)

    a = a_ref[...]  # bf16, mean-normalization already folded in

    @pl.when(phase == 0)
    def _layer1():
        # Neighbor mean: bf16 x bf16 MXU matmul, f32 accumulation.
        h_neigh = jnp.dot(a, x_ref[...], preferred_element_type=jnp.float32)
        x_self = x_ref[pl.ds(row0, tm), :].astype(jnp.float32)
        # Fused feature matmul: [self | neigh] @ [W_self; W_neigh] (f32).
        cat = jnp.concatenate([x_self, h_neigh], axis=-1)       # (tm, 2*FIN_P)
        h1 = jnp.dot(cat, w1_ref[...],
                     preferred_element_type=jnp.float32) + b1_ref[...]
        h1 = jnp.maximum(h1, 0.0)                                # ReLU
        h1_ref[pl.ds(row0, tm), :] = h1.astype(h1_ref.dtype)     # VMEM only

    @pl.when(phase == 1)
    def _layer2():
        h_neigh = jnp.dot(a, h1_ref[...], preferred_element_type=jnp.float32)
        h_self = h1_ref[pl.ds(row0, tm), :].astype(jnp.float32)
        cat = jnp.concatenate([h_self, h_neigh], axis=-1)        # (tm, 2*H_P)
        out = jnp.dot(cat, w2_ref[...],
                      preferred_element_type=jnp.float32) + b2_ref[...]
        o_ref[...] = out.astype(o_ref.dtype)


def graphsage_forward(adj, in_feat, params, *, row_tile=256,
                      vmem_limit_bytes=64 * 1024 * 1024):
    """GraphSAGE.forward: conv1 -> ReLU -> conv2, as one fused Pallas call.

    adj     : (N, N) dense float adjacency, adj[i, j] = 1 iff edge j -> i.
    in_feat : (N, in_feats) float node features.
    """
    assert row_tile % 8 == 0, "row_tile must be a multiple of 8"
    n = adj.shape[0]
    in_feats = in_feat.shape[1]
    h_feats = params["w_self1"].shape[1]

    fin_p = _round_up(in_feats, LANE)        # lane-dense padded feature widths
    h_p = _round_up(h_feats, LANE)
    tm = min(row_tile, _round_up(n, 8))      # row tile (multiple of 8)
    n_p = _round_up(n, tm)                   # pad N so tiles always divide
    n_tiles = n_p // tm

    # --- one-time host-side prep (tiny XLA ops) ---------------------------
    adj_f32 = adj.astype(jnp.float32)
    deg = jnp.sum(adj_f32, axis=-1, keepdims=True)
    inv_deg = 1.0 / jnp.maximum(deg, 1.0)                       # (N, 1)
    # Fold the mean normalization into A once, pad, and store bf16.
    a_scaled = jnp.pad(adj_f32 * inv_deg,
                       ((0, n_p - n), (0, n_p - n))).astype(jnp.bfloat16)

    x = jnp.pad(in_feat.astype(jnp.bfloat16),
                ((0, n_p - n), (0, fin_p - in_feats)))          # (N_P, FIN_P)

    def stack_pad(w_self, w_neigh, fin, fin_pad):
        ws = jnp.pad(w_self.astype(jnp.float32),
                     ((0, fin_pad - fin), (0, h_p - h_feats)))
        wn = jnp.pad(w_neigh.astype(jnp.float32),
                     ((0, fin_pad - fin), (0, h_p - h_feats)))
        return jnp.concatenate([ws, wn], axis=0)                # (2*fin_pad, H_P)

    w1 = stack_pad(params["w_self1"], params["w_neigh1"], in_feats, fin_p)
    w2 = stack_pad(params["w_self2"], params["w_neigh2"], h_feats, h_p)
    b1 = jnp.pad(params["b1"].reshape(1, -1).astype(jnp.float32),
                 ((0, 0), (0, h_p - h_feats)))
    b2 = jnp.pad(params["b2"].reshape(1, -1).astype(jnp.float32),
                 ((0, 0), (0, h_p - h_feats)))

    kernel = functools.partial(_fused_graphsage_kernel, tm=tm)
    single = pl.Buffered(1)   # grid-invariant operands: no double-buffering

    out = pl.pallas_call(
        kernel,
        out_shape=jax.ShapeDtypeStruct((n_p, h_p), jnp.float32),
        grid_spec=pltpu.PrefetchScalarGridSpec(
            num_scalar_prefetch=0,
            grid=(2, n_tiles),                      # (layer phase, dest-row tile)
            in_specs=[
                pl.BlockSpec((tm, n_p), lambda p, i: (i, 0)),             # A rows
                pl.BlockSpec((n_p, fin_p), lambda p, i: (0, 0),
                             pipeline_mode=single),                        # X (full)
                pl.BlockSpec((2 * fin_p, h_p), lambda p, i: (0, 0),
                             pipeline_mode=single),                        # W1
                pl.BlockSpec((1, h_p), lambda p, i: (0, 0),
                             pipeline_mode=single),                        # b1
                pl.BlockSpec((2 * h_p, h_p), lambda p, i: (0, 0),
                             pipeline_mode=single),                        # W2
                pl.BlockSpec((1, h_p), lambda p, i: (0, 0),
                             pipeline_mode=single),                        # b2
            ],
            # Phase 0 never writes o_ref; mapping all phase-0 steps to block
            # (0, 0) means each output tile is written back to HBM exactly
            # once (by its phase-1 step).
            out_specs=pl.BlockSpec((tm, h_p), lambda p, i: (i * p, 0)),
            scratch_shapes=[pltpu.VMEM((n_p, h_p), jnp.bfloat16)],        # h1
        ),
        compiler_params=pltpu.CompilerParams(
            # phase axis must run to completion before layer 2 reads h1, and
            # phase-1 row tiles read h1 rows written by other phase-0 tiles,
            # so both axes stay sequential ("arbitrary") — safe on megacore.
            dimension_semantics=("arbitrary", "arbitrary"),
            vmem_limit_bytes=vmem_limit_bytes,
        ),
    )(a_scaled, x, w1, b1, w2, b2)

    return out[:n, :h_feats]


def init_params(key, in_feats, h_feats):
    """Xavier-uniform-like init matching DGL SAGEConv(mean) parameter shapes."""
    ks = jax.random.split(key, 4)

    def xavier(k, fan_in, fan_out):
        limit = (6.0 / (fan_in + fan_out)) ** 0.5
        return jax.random.uniform(k, (fan_in, fan_out), jnp.float32,
                                  minval=-limit, maxval=limit)

    return {
        "w_self1": xavier(ks[0], in_feats, h_feats),
        "w_neigh1": xavier(ks[1], in_feats, h_feats),
        "b1": jnp.zeros((1, h_feats), jnp.float32),
        "w_self2": xavier(ks[2], h_feats, h_feats),
        "w_neigh2": xavier(ks[3], h_feats, h_feats),
        "b2": jnp.zeros((1, h_feats), jnp.float32),
    }


# TODO(synk): for genuinely sparse graphs a CSR / neighbor-list gather kernel
# (scalar-prefetched indices + DMA gather) would avoid the dense N^2 matmul.

if __name__ == "__main__":
    N = 256          # number of graph nodes (2 row tiles of 128)
    IN_FEATS = 16    # input feature dim
    H_FEATS = 32     # hidden feature dim

    key = jax.random.PRNGKey(0)
    k_adj, k_feat, k_par = jax.random.split(key, 3)

    # Random sparse-ish directed graph as a dense adjacency (dst-row layout).
    adj = jax.random.bernoulli(k_adj, p=0.05, shape=(N, N)).astype(jnp.float32)
    in_feat = jax.random.normal(k_feat, (N, IN_FEATS), jnp.float32)
    params = init_params(k_par, IN_FEATS, H_FEATS)

    out = graphsage_forward(adj, in_feat, params, row_tile=128)
    out = jax.block_until_ready(out)

    # Reference in plain JAX f32 (same math, no Pallas).
    deg = jnp.maximum(adj.sum(-1, keepdims=True), 1.0)
    h1 = jnp.maximum(
        in_feat @ params["w_self1"] + (adj @ in_feat / deg) @ params["w_neigh1"]
        + params["b1"], 0.0)
    ref = (h1 @ params["w_self2"] + (adj @ h1 / deg) @ params["w_neigh2"]
           + params["b2"])

    assert out.shape == (N, H_FEATS)
    # bf16 A/X/h1 with f32 accumulation: small quantization error vs f32 ref.
    assert jnp.allclose(out, ref, atol=3e-2, rtol=3e-2), \
        float(jnp.max(jnp.abs(out - ref)))

    print("KERNEL_OK")
</pallas_src>

<mosaic_0001>
module attributes {stable_mosaic.version = 11 : i64} {
  func.func @_fused_graphsage_kernel(%arg0: i32, %arg1: i32, %arg2: memref<128x256xbf16, #tpu.memory_space<vmem>>, %arg3: memref<256x128xbf16, #tpu.memory_space<vmem>>, %arg4: memref<256x128xf32, #tpu.memory_space<vmem>>, %arg5: memref<1x128xf32, #tpu.memory_space<vmem>>, %arg6: memref<256x128xf32, #tpu.memory_space<vmem>>, %arg7: memref<1x128xf32, #tpu.memory_space<vmem>>, %arg8: memref<128x128xf32, #tpu.memory_space<vmem>>, %arg9: memref<256x128xbf16, #tpu.memory_space<vmem>>) attributes {dimension_semantics = [#tpu.dimension_semantics<arbitrary>, #tpu.dimension_semantics<arbitrary>], iteration_bounds = array<i64: 2, 2>, scalar_prefetch = 0 : i64, scratch_operands = 1 : i64, tpu.core_type = #tpu.core_type<tc>, window_params = [{transform_indices = @transform_0, window_bounds = array<i64: 128, 256>}, {pipeline_mode = #tpu.pipeline_mode<synchronous>, transform_indices = @transform_1, window_bounds = array<i64: 256, 128>}, {pipeline_mode = #tpu.pipeline_mode<synchronous>, transform_indices = @transform_2, window_bounds = array<i64: 256, 128>}, {pipeline_mode = #tpu.pipeline_mode<synchronous>, transform_indices = @transform_3, window_bounds = array<i64: 1, 128>}, {pipeline_mode = #tpu.pipeline_mode<synchronous>, transform_indices = @transform_4, window_bounds = array<i64: 256, 128>}, {pipeline_mode = #tpu.pipeline_mode<synchronous>, transform_indices = @transform_5, window_bounds = array<i64: 1, 128>}, {transform_indices = @transform_6, window_bounds = array<i64: 128, 128>}]} {
    %c128_i32 = arith.constant 128 : i32
    %0 = arith.muli %arg1, %c128_i32 : i32
    %1 = tpu.assume_multiple %0, 128 : i32
    %c0 = arith.constant 0 : index
    %c0_0 = arith.constant 0 : index
    %2 = vector.load %arg2[%c0, %c0_0] : memref<128x256xbf16, #tpu.memory_space<vmem>>, vector<128x256xbf16>
    %c0_i32 = arith.constant 0 : i32
    %3 = arith.cmpi eq, %arg0, %c0_i32 : i32
    %4 = arith.extui %3 : i1 to i32
    %c0_i32_1 = arith.constant 0 : i32
    %5 = arith.cmpi ne, %4, %c0_i32_1 : i32
    scf.if %5 {
      %c0_3 = arith.constant 0 : index
      %c0_4 = arith.constant 0 : index
      %9 = vector.load %arg3[%c0_3, %c0_4] : memref<256x128xbf16, #tpu.memory_space<vmem>>, vector<256x128xbf16>
      %cst = arith.constant dense<0.000000e+00> : vector<128x128xf32>
      %10 = tpu.matmul %2, %9, %cst {dimension_numbers = #tpu.dot_dimension_numbers<[1], [0], [0], [1], [0, 0, 1, 1], [], []>} : vector<128x256xbf16>, vector<256x128xbf16>, vector<128x128xf32> -> vector<128x128xf32>
      %11 = arith.index_cast %1 : i32 to index
      %c0_5 = arith.constant 0 : index
      %12 = vector.load %arg3[%11, %c0_5] : memref<256x128xbf16, #tpu.memory_space<vmem>>, vector<128x128xbf16>
      %13 = arith.extf %12 : vector<128x128xbf16> to vector<128x128xf32>
      %14 = tpu.concatenate %13, %10 in 1 : vector<128x128xf32>, vector<128x128xf32> -> vector<128x256xf32>
      %c0_6 = arith.constant 0 : index
      %c0_7 = arith.constant 0 : index
      %15 = vector.load %arg4[%c0_6, %c0_7] : memref<256x128xf32, #tpu.memory_space<vmem>>, vector<256x128xf32>
      %cst_8 = arith.constant dense<0.000000e+00> : vector<128x128xf32>
      %16 = tpu.matmul %14, %15, %cst_8 {dimension_numbers = #tpu.dot_dimension_numbers<[1], [0], [0], [1], [0, 0, 1, 1], [], []>} : vector<128x256xf32>, vector<256x128xf32>, vector<128x128xf32> -> vector<128x128xf32>
      %c0_9 = arith.constant 0 : index
      %c0_10 = arith.constant 0 : index
      %17 = vector.load %arg5[%c0_9, %c0_10] : memref<1x128xf32, #tpu.memory_space<vmem>>, vector<1x128xf32>
      %18 = vector.broadcast %17 : vector<1x128xf32> to vector<128x128xf32>
      %19 = arith.addf %16, %18 : vector<128x128xf32>
      %cst_11 = arith.constant 0.000000e+00 : f32
      %20 = vector.broadcast %cst_11 : f32 to vector<128x128xf32>
      %21 = arith.maximumf %19, %20 : vector<128x128xf32>
      %22 = arith.truncf %21 : vector<128x128xf32> to vector<128x128xbf16>
      %23 = arith.index_cast %1 : i32 to index
      %c0_12 = arith.constant 0 : index
      %24 = vector.load %arg9[%23, %c0_12] : memref<256x128xbf16, #tpu.memory_space<vmem>>, vector<128x128xbf16>
      tpu.vector_store %arg9[%23, %c0_12], %22 {strides = array<i32>} : memref<256x128xbf16, #tpu.memory_space<vmem>>, vector<128x128xbf16>,
    } else {
    }
    %c1_i32 = arith.constant 1 : i32
    %6 = arith.cmpi eq, %arg0, %c1_i32 : i32
    %7 = arith.extui %6 : i1 to i32
    %c0_i32_2 = arith.constant 0 : i32
    %8 = arith.cmpi ne, %7, %c0_i32_2 : i32
    scf.if %8 {
      %c0_3 = arith.constant 0 : index
      %c0_4 = arith.constant 0 : index
      %9 = vector.load %arg9[%c0_3, %c0_4] : memref<256x128xbf16, #tpu.memory_space<vmem>>, vector<256x128xbf16>
      %cst = arith.constant dense<0.000000e+00> : vector<128x128xf32>
      %10 = tpu.matmul %2, %9, %cst {dimension_numbers = #tpu.dot_dimension_numbers<[1], [0], [0], [1], [0, 0, 1, 1], [], []>} : vector<128x256xbf16>, vector<256x128xbf16>, vector<128x128xf32> -> vector<128x128xf32>
      %11 = arith.index_cast %1 : i32 to index
      %c0_5 = arith.constant 0 : index
      %12 = vector.load %arg9[%11, %c0_5] : memref<256x128xbf16, #tpu.memory_space<vmem>>, vector<128x128xbf16>
      %13 = arith.extf %12 : vector<128x128xbf16> to vector<128x128xf32>
      %14 = tpu.concatenate %13, %10 in 1 : vector<128x128xf32>, vector<128x128xf32> -> vector<128x256xf32>
      %c0_6 = arith.constant 0 : index
      %c0_7 = arith.constant 0 : index
      %15 = vector.load %arg6[%c0_6, %c0_7] : memref<256x128xf32, #tpu.memory_space<vmem>>, vector<256x128xf32>
      %cst_8 = arith.constant dense<0.000000e+00> : vector<128x128xf32>
      %16 = tpu.matmul %14, %15, %cst_8 {dimension_numbers = #tpu.dot_dimension_numbers<[1], [0], [0], [1], [0, 0, 1, 1], [], []>} : vector<128x256xf32>, vector<256x128xf32>, vector<128x128xf32> -> vector<128x128xf32>
      %c0_9 = arith.constant 0 : index
      %c0_10 = arith.constant 0 : index
      %17 = vector.load %arg7[%c0_9, %c0_10] : memref<1x128xf32, #tpu.memory_space<vmem>>, vector<1x128xf32>
      %18 = vector.broadcast %17 : vector<1x128xf32> to vector<128x128xf32>
      %19 = arith.addf %16, %18 : vector<128x128xf32>
      %c0_11 = arith.constant 0 : index
      %c0_12 = arith.constant 0 : index
      %20 = vector.load %arg8[%c0_11, %c0_12] : memref<128x128xf32, #tpu.memory_space<vmem>>, vector<128x128xf32>
      tpu.vector_store %arg8[%c0_11, %c0_12], %19 {strides = array<i32>} : memref<128x128xf32, #tpu.memory_space<vmem>>, vector<128x128xf32>,
    } else {
    }
    return
  }
  func.func @transform_0(%arg0: i32, %arg1: i32) -> (i32, i32) {
    %c0_i32 = arith.constant 0 : i32
    %c0_i32_0 = arith.constant 0 : i32
    return %arg1, %c0_i32 : i32, i32
  }
  func.func @transform_1(%arg0: i32, %arg1: i32) -> (i32, i32) {
    %c0_i32 = arith.constant 0 : i32
    %c0_i32_0 = arith.constant 0 : i32
    %c0_i32_1 = arith.constant 0 : i32
    return %c0_i32, %c0_i32_0 : i32, i32
  }
  func.func @transform_2(%arg0: i32, %arg1: i32) -> (i32, i32) {
    %c0_i32 = arith.constant 0 : i32
    %c0_i32_0 = arith.constant 0 : i32
    %c0_i32_1 = arith.constant 0 : i32
    return %c0_i32, %c0_i32_0 : i32, i32
  }
  func.func @transform_3(%arg0: i32, %arg1: i32) -> (i32, i32) {
    %c0_i32 = arith.constant 0 : i32
    %c0_i32_0 = arith.constant 0 : i32
    %c0_i32_1 = arith.constant 0 : i32
    return %c0_i32, %c0_i32_0 : i32, i32
  }
  func.func @transform_4(%arg0: i32, %arg1: i32) -> (i32, i32) {
    %c0_i32 = arith.constant 0 : i32
    %c0_i32_0 = arith.constant 0 : i32
    %c0_i32_1 = arith.constant 0 : i32
    return %c0_i32, %c0_i32_0 : i32, i32
  }
  func.func @transform_5(%arg0: i32, %arg1: i32) -> (i32, i32) {
    %c0_i32 = arith.constant 0 : i32
    %c0_i32_0 = arith.constant 0 : i32
    %c0_i32_1 = arith.constant 0 : i32
    return %c0_i32, %c0_i32_0 : i32, i32
  }
  func.func @transform_6(%arg0: i32, %arg1: i32) -> (i32, i32) {
    %0 = arith.muli %arg1, %arg0 : i32
    %c0_i32 = arith.constant 0 : i32
    %c0_i32_0 = arith.constant 0 : i32
    return %0, %c0_i32 : i32, i32
  }
}

</mosaic_0001>

<bundles_post_ra>
// kernel: tpu_custom_call.1
= control target key start
LH: loop header
LB: loop body
LE: loop exit
PB: predicated region body
PF: predicated region fallthrough
CT: control target
= control target key end

     0   :  { %s3114_s0 = inlined_call_operand.hbm [shape: bf16[256,256], index: 0, kind: input, shape index: {}]   ;;  %s3115_s1 = inlined_call_operand.hbm [shape: bf16[256,128], index: 1, kind: input, shape index: {}]   ;;  %s3116_s2 = inlined_call_operand.hbm [shape: f32[256,128], index: 2, kind: input, shape index: {}]   ;;  %s3117_s3 = inlined_call_operand.hbm [shape: f32[1,128], index: 3, kind: input, shape index: {}]   ;;  %s3118_s4 = inlined_call_operand.hbm [shape: f32[256,128], index: 4, kind: input, shape index: {}]   ;;  %s3119_s5 = inlined_call_operand.hbm [shape: f32[1,128], index: 5, kind: input, shape index: {}]   ;;  %s3120_s6 = inlined_call_operand.hbm [shape: f32[256,128], index: 6, kind: output, shape index: {}]  }
   0x1   :  { %3131 = sst [smem:[#allocation24_spill]] %s3114_s0 }
   0x2   :  { %3132 = sst [smem:[#allocation25_spill]] %s3115_s1 }
   0x3   :  { %3133 = sst [smem:[#allocation26_spill]] %s3116_s2 }
   0x4   :  { %3134 = sst [smem:[#allocation27_spill]] %s3120_s6 }
   0x5   :  { %11 = vsyncpa [#allocation4], 0 }
   0x6   :  { %13 = vsyncpa [#allocation4 + $0x1], 0 }
   0x7   :  { %14 = vsyncpa [#allocation7], 0 }
   0x8   :  { %15 = vsyncpa [#allocation10], 0 }
   0x9   :  { %16 = vsyncpa [#allocation13], 0 }
   0xa   :  { %17 = vsyncpa [#allocation5], 0 }
   0xb   :  { %19 = vsyncpa [#allocation5 + $0x1], 0  ;;  %s2523_s21 = smov 0   ;;  %s2525_s22 = smov 0  }
   0xc   :  { %s2527_s23 = smov 0   ;;  %s2529_s24 = smov 0  }
   0xd   :  { %s2531_s25 = smov 0   ;;  %s2533_s26 = smov 0  }
   0xe   :  { %s2535_s27 = smov 0   ;;  %s2537_s28 = smov 0  }
   0xf   :  { %s2539_s29 = smov 0   ;;  %s2541_s30 = smov 0  }
  0x10   :  { %s2543_s7 = smov 0  }
  0x11 LB: > { %3135 = sst [smem:[#allocation20_spill]] %s2457_s27  ;;  %s1518_s8 = sadd.s32 4294967295, %s2473_s7   ;;  %s2473_s7 = sphi %s2543_s7, %s25_s7   ;;  %s2469_s30 = sphi %s2541_s30, %s3177_s30   ;;  %s2465_s29 = sphi %s2539_s29, %s3176_s29   ;;  %s2461_s28 = sphi %s2537_s28, %s3175_s28   ;;  %s2457_s27 = sphi %s2535_s27, %s3174_s27   ;;  %s2453_s26 = sphi %s2533_s26, %s3173_s26   ;;  %s2449_s25 = sphi %s2531_s25, %s3172_s25   ;;  %s2445_s24 = sphi %s2529_s24, %s3171_s24   ;;  %s2441_s23 = sphi %s2527_s23, %s3170_s23   ;;  %s2437_s22 = sphi %s2525_s22, %s3169_s22   ;;  %s2433_s21 = sphi %s2523_s21, %s3168_s21  }
  0x12   : > { %3136 = sst [smem:[#allocation21_spill]] %s2461_s28  ;;  %p1520_p0 = scmp.ge.s32.totalorder %s2473_s7, 1 }
  0x13   : > { %p2580_p1 = scmp.eq.s32.totalorder %s1518_s8, 0  ;;  %p2584_p2 = scmp.eq.s32.totalorder %s1518_s8, 3 }
  0x14   : > { %p201_p3 = scmp.lt.s32.totalorder %s2473_s7, 5  ;;  %s2475_s12 = smov [#allocation6]  }
  0x15   : > { %s3137_s9 = scalar_select %p2580_p1, 1, 0 }
  0x16   : > { %s3138_s10 = scalar_select %p2584_p2, 1, 0 }
  0x17   : > { %p2589_p4 = pnand %p1520_p0, %p201_p3  ;;  %s213_s13 = sshll.u32 %s2475_s12, 4  ;;  %s2593_s13 = int_to_ptr.vmem [resolvable:$true] %s213_s13 }
  0x18   : > { %3139 = sst [smem:[#allocation22_spill]] %s3138_s10  ;;  %s2476_s15 = smov [#allocation9]  }
  0x19   : > { %s3140_s11 = scalar_select %p2589_p4, 1, 0 }
  0x1a   : > { %p2018_p5 = pneg %p2589_p4  ;;  %s240_s16 = sshll.u32 %s2476_s15, 4  ;;  %s2603_s16 = int_to_ptr.vmem [resolvable:$true] %s240_s16 }
  0x1b   : > { %3141 = sst [smem:[#allocation23_spill]] %s3140_s11  ;;  %s2477_s17 = smov [#allocation8]  }
  0x1c   : > { %p2599_p6 = pnand %p2018_p5, %p2580_p1  ;;  %s226_s18 = sshll.u32 %s2477_s17, 4  ;;  %s2605_s18 = int_to_ptr.vmem [resolvable:$true] %s226_s18 }
  0x1d   : > { %s3143_s1 = sld [smem:[#allocation25_spill]] }
  0x1e   : > { %p2615_p8 = pneg %p2599_p6 }
  0x23   : > { %s2169_s8 = scalar_lea.hbm %s3143_s1, 2048 }
  0x24   : > { %p2170_p7 = scmp.ne.s32.totalorder %s3143_s1, %s2169_s8  ;;  %p2176_p11 = scmp.lt.u32.totalorder %s2169_s8, %s3143_s1 }
  0x26   : > { %p2172_p9 = pnand %p2615_p8, %p2170_p7 }
  0x28   : > { %p2173_p10 = pneg %p2172_p9 }
  0x2a   : > { %p2178_p12 = pnand %p2176_p11, %p2173_p10 }
  0x2c   : > { %2181 = shalt.err (!%p2178_p12)
}
  0x2d   : > { %s2182_s6 = scalar_lea.vmem %s2593_s13, 2048  ;;  %p2190_p5 = scmp.lt.s32.totalorder %s2593_s13, %s2593_s13 }
  0x2e   : > { %p2183_p13 = scmp.ne.s32.totalorder %s2593_s13, %s2182_s6  ;;  %p2191_p4 = scmp.lt.s32.totalorder %s2182_s6, %s2182_s6 }
  0x30   : > { %p2185_p0 = pnand %p2183_p13, %p2615_p8  ;;  %p2192_p7 = por %p2191_p4, %p2190_p5 }
  0x32   : > { %p2186_p3 = pneg %p2185_p0 }
  0x34   : > { %p2193_p9 = pnand %p2192_p7, %p2186_p3 }
  0x36   : > { %2196 = shalt.err (!%p2193_p9)
}
  0x37   : > { %s2478_s19 = smov 64   ;;  %s2479_s20 = smov 4  }
  0x38   : > { %2021 = dma.hbm_to_vmem [thread:$0]  (!%p2599_p6), %s3143_s1, 2048, %s2593_s13, [#allocation7], %s2478_s19, %s2478_s19, %s2479_s20  }
  0x39   : > { %s2197_s27 = scalar_lea.hbm %s3117_s3, 16 }
  0x3a   : > { %p2198_p4 = scmp.ne.s32.totalorder %s3117_s3, %s2197_s27  ;;  %p2204_p12 = scmp.lt.u32.totalorder %s2197_s27, %s3117_s3 }
  0x3c   : > { %p2200_p10 = pnand %p2198_p4, %p2615_p8 }
  0x3e   : > { %p2201_p11 = pneg %p2200_p10 }
  0x40   : > { %p2206_p13 = pnand %p2204_p12, %p2201_p11 }
  0x42   : > { %2209 = shalt.err (!%p2206_p13)
}
  0x43   : > { %s2210_s13 = scalar_lea.vmem %s2603_s16, 16  ;;  %s2217_s0 = scalar_lea.vmem %s2603_s16, 32 }
  0x44   : > { %p2211_p0 = scmp.ne.s32.totalorder %s2603_s16, %s2210_s13  ;;  %p2218_p7 = scmp.lt.s32.totalorder %s2603_s16, %s2603_s16 }
  0x45   : > { %p2219_p9 = scmp.lt.s32.totalorder %s2217_s0, %s2210_s13 }
  0x46   : > { %p2213_p3 = pnand %p2211_p0, %p2615_p8 }
  0x47   : > { %p2220_p4 = por %p2219_p9, %p2218_p7 }
  0x48   : > { %p2214_p5 = pneg %p2213_p3 }
  0x4a   : > { %p2221_p10 = pnand %p2220_p4, %p2214_p5 }
  0x4c   : > { %2224 = shalt.err (!%p2221_p10)
}
  0x4d   : > { %2027 = dma.hbm_to_vmem [thread:$0]  (!%p2599_p6), %s3117_s3, 16, %s2603_s16, [#allocation10]  }
  0x4e   : > { %s3145_s2 = sld [smem:[#allocation26_spill]] }
  0x54   : > { %s2225_s20 = scalar_lea.hbm %s3145_s2, 4096 }
  0x55   : > { %p2226_p11 = scmp.ne.s32.totalorder %s3145_s2, %s2225_s20  ;;  %p2232_p0 = scmp.lt.u32.totalorder %s2225_s20, %s3145_s2 }
  0x57   : > { %p2228_p12 = pnand %p2226_p11, %p2615_p8 }
  0x59   : > { %p2229_p13 = pneg %p2228_p12 }
  0x5b   : > { %p2234_p3 = pnand %p2232_p0, %p2229_p13 }
  0x5d   : > { %2237 = shalt.err (!%p2234_p3)
}
  0x5e   : > { %s2238_s16 = scalar_lea.vmem %s2605_s18, 4096  ;;  %p2246_p4 = scmp.lt.s32.totalorder %s2605_s18, %s2605_s18 }
  0x5f   : > { %p2239_p5 = scmp.ne.s32.totalorder %s2605_s18, %s2238_s16  ;;  %p2247_p10 = scmp.lt.s32.totalorder %s2238_s16, %s2238_s16 }
  0x61   : > { %p2241_p7 = pnand %p2239_p5, %p2615_p8  ;;  %p2248_p11 = por %p2247_p10, %p2246_p4 }
  0x63   : > { %p2242_p9 = pneg %p2241_p7 }
  0x65   : > { %p2249_p12 = pnand %p2248_p11, %p2242_p9 }
  0x67   : > { %2252 = shalt.err (!%p2249_p12)
}
  0x68   : > { %s3128_s6 = smov 128   ;;  %s3129_s13 = smov 8  }
  0x69   : > { %2024 = dma.hbm_to_vmem [thread:$0]  (!%p2599_p6), %s3145_s2, 4096, %s2605_s18, [#allocation7], %s3128_s6, %s3128_s6, %s3129_s13  }
  0x6a   : > { %s2482_s10 = smov [#allocation11]   ;;  %s2483_s19 = smov [#allocation12]  }
  0x6b   : > { %s250_s11 = sshll.u32 %s2482_s10, 4  ;;  %s264_s20 = sshll.u32 %s2483_s19, 4  ;;  %s251_s11 = int_to_ptr.vmem [resolvable:$true] %s250_s11  ;;  %s2686_s20 = int_to_ptr.vmem [resolvable:$true] %s264_s20 }
  0x6c   : > { %s2253_s15 = scalar_lea.hbm %s3118_s4, 4096 }
  0x6d   : > { %p2254_p13 = scmp.ne.s32.totalorder %s3118_s4, %s2253_s15  ;;  %p2260_p5 = scmp.lt.u32.totalorder %s2253_s15, %s3118_s4 }
  0x6f   : > { %p2256_p0 = pnand %p2254_p13, %p2615_p8 }
  0x71   : > { %p2257_p3 = pneg %p2256_p0 }
  0x73   : > { %p2262_p7 = pnand %p2260_p5, %p2257_p3 }
  0x75   : > { %2265 = shalt.err (!%p2262_p7)
}
  0x76   : > { %s2266_s27 = scalar_lea.vmem %s251_s11, 4096  ;;  %p2274_p11 = scmp.lt.s32.totalorder %s251_s11, %s251_s11 }
  0x77   : > { %p2267_p9 = scmp.ne.s32.totalorder %s251_s11, %s2266_s27  ;;  %p2275_p12 = scmp.lt.s32.totalorder %s2266_s27, %s2266_s27 }
  0x79   : > { %p2269_p4 = pnand %p2267_p9, %p2615_p8  ;;  %p2276_p2 = por %p2275_p12, %p2274_p11 }
  0x7b   : > { %p2270_p10 = pneg %p2269_p4 }
  0x7d   : > { %p2277_p1 = pnand %p2276_p2, %p2270_p10 }
  0x7f   : > { %2280 = shalt.err (!%p2277_p1)
}
  0x80   : > { %2030 = dma.hbm_to_vmem [thread:$0]  (!%p2599_p6), %s3118_s4, 4096, %s251_s11, [#allocation10], %s3128_s6, %s3128_s6, %s3129_s13  }
  0x81   : > { %s2281_s15 = scalar_lea.hbm %s3119_s5, 16 }
  0x82   : > { %p2282_p13 = scmp.ne.s32.totalorder %s3119_s5, %s2281_s15  ;;  %p2288_p0 = scmp.lt.u32.totalorder %s2281_s15, %s3119_s5 }
  0x84   : > { %p2284_p1 = pnand %p2282_p13, %p2615_p8 }
  0x86   : > { %p2285_p2 = pneg %p2284_p1 }
  0x88   : > { %p2290_p3 = pnand %p2288_p0, %p2285_p2 }
  0x8a   : > { %2293 = shalt.err (!%p2290_p3)
}
  0x8b   : > { %s2294_s11 = scalar_lea.vmem %s2686_s20, 16  ;;  %s2301_s27 = scalar_lea.vmem %s2686_s20, 32 }
  0x8c   : > { %p2295_p5 = scmp.ne.s32.totalorder %s2686_s20, %s2294_s11  ;;  %p2302_p4 = scmp.lt.s32.totalorder %s2686_s20, %s2686_s20 }
  0x8d   : > { %p2303_p10 = scmp.lt.s32.totalorder %s2301_s27, %s2294_s11 }
  0x8e   : > { %p2297_p7 = pnand %p2295_p5, %p2615_p8 }
  0x8f   : > { %p2304_p11 = por %p2303_p10, %p2302_p4 }
  0x90   : > { %p2298_p9 = pneg %p2297_p7 }
  0x92   : > { %p2305_p12 = pnand %p2304_p11, %p2298_p9 }
  0x94   : > { %2308 = shalt.err (!%p2305_p12)
}
  0x95   : > { %2033 = dma.hbm_to_vmem [thread:$0]  (!%p2599_p6), %s3119_s5, 16, %s2686_s20, [#allocation13]  }
  0x96   : > { %s1519_s28 = sadd.s32 4294967294, %s2473_s7   ;;  %s34_s14 = sadd.s32 1, %s2465_s29 }
  0x97   : > { %p35_p8 = scmp.ge.s32.totalorder %s34_s14, 2  ;;  %s37_s8 = sadd.s32 1, %s2469_s30 }
  0x98   : > { %s44_s12 = sadd.s32 1, %s2453_s26  ;;  %p51_p13 = scmp.ne.s32.totalorder %s2453_s26, %s2449_s25 }
  0x99   : > { %s3179_s14 = smov (%p35_p8, %s34_s14), 0  ;;  %s3181_s8 = smov (!%p35_p8, %s37_s8), %s2469_s30 }
  0x9a   : > { %s41_s20 = ssub.s32 %s2465_s29, %s3179_s14  ;;  %p52_p6 = scmp.eq.s32.totalorder %s2473_s7, 0 }
  0x9b   : > { %s3146_s15 = sld [smem:[#allocation22_spill]]  ;;  %p39_p1 = scmp.ge.s32.totalorder %s3181_s8, 2 }
  0x9c   : > { %p42_p2 = scmp.eq.s32.totalorder %s41_s20, 0  ;;  %p2745_p0 = por %p52_p6, %p51_p13 }
  0x9d   : > { %p57_p3 = scmp.ne.s32.totalorder %s2449_s25, %s2445_s24  ;;  %s3183_s8 = smov (%p39_p1, %s3181_s8), 0 }
  0x9e   : > { %s2754_s16 = scalar_select %p42_p2, %s2453_s26, %s44_s12  }
  0x9f   : > { %p3148_p5 = scmp.ne.s32.totalorder %s3137_s9, 0  ;;  %s172_s18 = smul.u32 %s2465_s29, %s2469_s30 }
  0xa0   : > { %s173_s11 = smul.u32 %s3183_s8, %s3179_s14  ;;  %s177_s27 = sadd.s32 1, %s2441_s23 }
  0xa1   : > { %p2758_p7 = por %p3148_p5, %p57_p3  ;;  %p187_p9 = scmp.ne.s32.totalorder %s2441_s23, %s2437_s22 }
  0xa2   : > { %p193_p4 = scmp.ne.s32.totalorder %s2437_s22, %s2433_s21  ;;  %s174_s10 = ssub.s32 %s172_s18, %s173_s11 }
  0xa3   : > { %p194_p10 = scmp.eq.s32.totalorder %s1519_s28, 3  ;;  %p175_p11 = scmp.eq.s32.totalorder %s174_s10, 0 }
  0xa4   : > { %p3150_p12 = scmp.ne.s32.totalorder %s3146_s15, 0  ;;  %p2047_p6 = scmp.lt.s32.totalorder %s2473_s7, 4 }
  0xa5   : > { %p2777_p13 = por %p194_p10, %p193_p4  ;;  %s275_s20 = sand.u32 1, %s2453_s26  }
  0xa6   : > { %p2773_p8 = por %p3150_p12, %p187_p9  ;;  %s1601_s6 = sshll.u32 %s2465_s29, 11 }
  0xa7   : > { %s3152_s19 = scalar_select %p2777_p13, 1, 0 }
  0xa8   : > { %s3151_s24 = scalar_select %p2773_p8, 1, 0 }
  0xa9   : > { %s2783_s12 = scalar_select %p175_p11, %s2441_s23, %s177_s27  }
  0xaa   : > { %s1527_s13 = sshll.u32 %s275_s20, 7  ;;  %s3153_s18 = sld [smem:[#allocation24_spill]] }
  0xab   : > { %s279_s15 = scalar_lea.vmem [#allocation3], %s1527_s13  ;;  %p2794_p1 = pnand %p2047_p6, %p2745_p0 }
  0xac   : > { %s287_s11 = sshll.u32 %s279_s15, 4  ;;  %s2800_s27 = scalar_lea.sflag [#allocation4], %s275_s20  ;;  %s2798_s11 = int_to_ptr.vmem [resolvable:$true] %s287_s11 }
  0xad   : > { %p2311_p3 = pneg %p2794_p1 }
  0xb0   : > { %s2790_s28 = scalar_lea.hbm %s3153_s18, %s1601_s6  ;;  %s2314_s13 = scalar_lea.hbm %s3153_s18, 4096 }
  0xb1   : > { %s2309_s1 = scalar_lea.hbm %s2790_s28, 2048  ;;  %p2315_p0 = scmp.lt.u32.totalorder %s2790_s28, %s3153_s18 }
  0xb2   : > { %p2310_p2 = scmp.ne.s32.totalorder %s2790_s28, %s2309_s1  ;;  %p2316_p4 = scmp.lt.u32.totalorder %s2314_s13, %s2309_s1 }
  0xb3   : > { %p2318_p11 = scmp.lt.u32.totalorder %s2309_s1, %s2790_s28 }
  0xb4   : > { %p2312_p5 = pnand %p2311_p3, %p2310_p2  ;;  %p2317_p10 = por %p2316_p4, %p2315_p0 }
  0xb6   : > { %p2313_p9 = pneg %p2312_p5  ;;  %p2319_p12 = por %p2318_p11, %p2317_p10 }
  0xb8   : > { %p2320_p6 = pnand %p2319_p12, %p2313_p9 }
  0xba   : > { %2323 = shalt.err (!%p2320_p6)
}
  0xbb   : > { %s2324_s20 = scalar_lea.vmem %s2798_s11, 2048  ;;  %s2484_s2 = smov [#allocation3]  }
  0xbc   : > { %p2325_p2 = scmp.ne.s32.totalorder %s2798_s11, %s2324_s20  ;;  %s2329_s6 = sshll.u32 %s2484_s2, 4  ;;  %s2330_s6 = int_to_ptr.vmem [resolvable:$false] %s2329_s6 }
  0xbd   : > { %s2331_s17 = scalar_lea.vmem %s2330_s6, 4096  ;;  %p2332_p8 = scmp.lt.s32.totalorder %s2798_s11, %s2330_s6 }
  0xbe   : > { %p2327_p5 = pnand %p2325_p2, %p2311_p3  ;;  %p2333_p0 = scmp.lt.s32.totalorder %s2331_s17, %s2324_s20 }
  0xc0   : > { %p2328_p13 = pneg %p2327_p5  ;;  %p2334_p4 = por %p2333_p0, %p2332_p8 }
  0xc2   : > { %p2335_p10 = pnand %p2334_p4, %p2328_p13 }
  0xc4   : > { %2338 = shalt.err (!%p2335_p10)
}
  0xc5   : > { %s3155_s1 = smov 8   ;;  %s3156_s13 = smov 128  }
  0xc6   : > { %2037 = dma.hbm_to_vmem [thread:$0]  (!%p2794_p1), %s2790_s28, 2048, %s2798_s11, %s2800_s27, %s3156_s13, %s3156_s13, %s3155_s1  }
  0xc7   : > { %s3157_s15 = sld [smem:[#allocation23_spill]] }
  0xcd   : > { %p3158_p3 = scmp.ne.s32.totalorder %s3157_s15, 0 }
  0xce   : > { %s301_s2 = sand.u32 (!%p3158_p3), 1, %s2449_s25  }
  0xcf   : > { %299 = sbr.rel (%p3158_p3) target bundleno = 1324 (0x52c), region = 44  ;;  %s1532_s6 = sshll.u32 (!%p3158_p3), %s301_s2, 7 }
  0xd0   : > { %s302_s20 = scalar_lea.sflag (!%p3158_p3), [#allocation4], %s301_s2  ;;  %s305_s17 = scalar_lea.vmem (!%p3158_p3), [#allocation3], %s1532_s6 }
  0xd6   : > { %2412 = dma.done.wait (%p2758_p7), %s302_s20, 2048  }
  0xd7   : > { %2414 = vsyncadd (%p2758_p7), %s302_s20, 4294965248  ;;  %p3159_p8 = scmp.ne.s32.totalorder %s3137_s9, 0 }
  0xd9   : > { %2416 = dma.done.wait (%p3159_p8), [#allocation7], 6144  }
  0xda   : > { %2418 = vsyncadd (%p3159_p8), [#allocation7], 4294961152 }
  0xdb   : > { %2420 = dma.done.wait (%p3159_p8), [#allocation10], 4112  }
  0xdc   : > { %2422 = vsyncadd (%p3159_p8), [#allocation10], 4294963184 }
  0xdd   : > { %2424 = dma.done.wait (%p3159_p8), [#allocation13], 16  }
  0xde   : > { %2426 = vsyncadd (%p3159_p8), [#allocation13], 4294967280  ;;  %s3160_s0 = sld [smem:[#allocation20_spill]]  ;;  %s351_s28 = sand.u32 1, %s2437_s22   ;;  %v2856_v0 = vld [vmem:[%s305_s17] sm:$0xff]  ;;  %v2858_v1 = vld [vmem:[%s305_s17 + $0x8] sm:$0xff] }
  0xdf   : > { %s1538_s10 = sshll.u32 %s351_s28, 7  ;;  %v2860_v2 = vld [vmem:[%s305_s17 + $0x10] sm:$0xff]  ;;  %v2862_v3 = vld [vmem:[%s305_s17 + $0x18] sm:$0xff]  ;;  %v2864_v4 = vld [vmem:[%s305_s17 + $0x20] sm:$0xff]  ;;  %s3161_s27 = sld [smem:[#allocation21_spill]] }
  0xe0   : > { %v2866_v5 = vld [vmem:[%s305_s17 + $0x28] sm:$0xff]  ;;  %v2868_v6 = vld [vmem:[%s305_s17 + $0x30] sm:$0xff]  ;;  %v2870_v7 = vld [vmem:[%s305_s17 + $0x38] sm:$0xff]  ;;  %s2888_s9 = scalar_lea.vmem [#allocation14], %s1538_s10 }
  0xe1   : > { %v2872_v8 = vld [vmem:[%s305_s17 + $0x40] sm:$0xff]  ;;  %v2874_v9 = vld [vmem:[%s305_s17 + $0x48] sm:$0xff]  ;;  %v2876_v10 = vld [vmem:[%s305_s17 + $0x50] sm:$0xff] }
  0xe2   : > { %v2878_v11 = vld [vmem:[%s305_s17 + $0x58] sm:$0xff]  ;;  %v2880_v12 = vld [vmem:[%s305_s17 + $0x60] sm:$0xff]  ;;  %v2882_v13 = vld [vmem:[%s305_s17 + $0x68] sm:$0xff] }
  0xe3   : > { %v2884_v14 = vld [vmem:[%s305_s17 + $0x70] sm:$0xff]  ;;  %v2886_v15 = vld [vmem:[%s305_s17 + $0x78] sm:$0xff] }
  0xe4   : > { %s2852_s11 = sshll.u32 %s3160_s0, 7 }
  0xe5   : > { %p1540_p7 = scmp.ne.s32.totalorder %s3161_s27, 0 }
  0xe6   : > { %v2153_v16 = vld [vmem:[#allocation6 + $0x40] sm:$0xff] (!%p1540_p7)   ;;  %v1542_v17 = vcombine.high (!%p1540_p7), %v2856_v0, %v2858_v1  ;;  %v2155_v19 = vld [vmem:[#allocation6 + $0x48] sm:$0xff] (!%p1540_p7)   ;;  %v2157_v21 = vld [vmem:[#allocation6 + $0x50] sm:$0xff] (!%p1540_p7)   ;;  %v1541_v62 = vcombine.low (!%p1540_p7), %v2856_v0, %v2858_v1  ;;  %s684_s1 = sshra.s32 (!%p1540_p7), %s2852_s11, 3  ;;  %s928_s2 = sshra.s32 (!%p1540_p7), %s2852_s11, 4 }
  0xe7   : > { %378 = sbr.rel (%p1540_p7) target bundleno = 761 (0x2f9), region = 72  ;;  %v2154_v18 = vld [vmem:[#allocation6] sm:$0xff] (!%p1540_p7)   ;;  %1642 = vmatprep.subr.bf16.mxu0 (!%p1540_p7), %v2153_v16  ;;  %v2156_v20 = vld [vmem:[#allocation6 + $0x8] sm:$0xff] (!%p1540_p7)   ;;  %v2158_v22 = vld [vmem:[#allocation6 + $0x10] sm:$0xff] (!%p1540_p7)   ;;  %s1573_s13 = sshll.u32 (!%p1540_p7), %s684_s1, 2 }
  0xe8   : > { %619 = vmatprep.mubr.bf16.mxu0 (!%p1540_p7), %v1542_v17  ;;  %1643 = vmatpush3.bf16.msra.mxu0 (!%p1540_p7), %v2154_v18  ;;  %v2159_v23 = vld [vmem:[#allocation6 + $0x58] sm:$0xff] (!%p1540_p7)   ;;  %v2161_v25 = vld [vmem:[#allocation6 + $0x60] sm:$0xff] (!%p1540_p7)   ;;  %v2163_v27 = vld [vmem:[#allocation6 + $0x68] sm:$0xff] (!%p1540_p7)   ;;  %v1544_v17 = vcombine.high (!%p1540_p7), %v2860_v2, %v2862_v3  ;;  %s2924_s15 = scalar_lea.vmem (!%p1540_p7), [#allocation6], %s1573_s13  ;;  %s1575_s6 = sshll.u32 (!%p1540_p7), %s928_s2, 3 }
  0xe9   : > { %1644 = vmatprep.subr.bf16.mxu0 (!%p1540_p7), %v2155_v19  ;;  %v2160_v24 = vld [vmem:[#allocation6 + $0x18] sm:$0xff] (!%p1540_p7)   ;;  %v2162_v26 = vld [vmem:[#allocation6 + $0x20] sm:$0xff] (!%p1540_p7)   ;;  %v737_v29 = vld [vmem:[#allocation8 + $0x88] sm:$0xff] (!%p1540_p7)  ;;  %s2939_s20 = scalar_lea.vmem (!%p1540_p7), [#allocation2], %s1575_s6 }
  0xea   : > { %v736_v28 = vld [vmem:[#allocation8 + $0x80] sm:$0xff] (!%p1540_p7)  ;;  %v721_v32 = vld [vmem:[#allocation8 + $0x8] sm:$0xff] (!%p1540_p7)  ;;  %v738_v33 = vld [vmem:[#allocation8 + $0x90] sm:$0xff] (!%p1540_p7) }
  0xeb   : > { %v720_v30 = vld [vmem:[#allocation8] sm:$0xff] (!%p1540_p7)  ;;  %v1930_v31 = vpack.c.bf16 (!%p1540_p7), %v737_v29, %v736_v28  ;;  %v739_v34 = vld [vmem:[#allocation8 + $0x98] sm:$0xff] (!%p1540_p7)  ;;  %v722_v37 = vld [vmem:[#allocation8 + $0x10] sm:$0xff] (!%p1540_p7)  ;;  %v1543_v28 = vcombine.low (!%p1540_p7), %v2860_v2, %v2862_v3  ;;  %v1546_v29 = vcombine.high (!%p1540_p7), %v2864_v4, %v2866_v5 }
  0xec   : > { %1645 = vmatpush3.bf16.msra.mxu0 (!%p1540_p7), %v2156_v20  ;;  %v1932_v35 = vpack.c.bf16 (!%p1540_p7), %v721_v32, %v720_v30  ;;  %v1934_v36 = vpack.c.bf16 (!%p1540_p7), %v739_v34, %v738_v33  ;;  %v723_v38 = vld [vmem:[#allocation8 + $0x18] sm:$0xff] (!%p1540_p7)  ;;  %v740_v39 = vld [vmem:[#allocation8 + $0xa0] sm:$0xff] (!%p1540_p7)  ;;  %v2164_v40 = vld [vmem:[#allocation6 + $0x28] sm:$0xff] (!%p1540_p7)   ;;  %v1548_v32 = vcombine.high (!%p1540_p7), %v2868_v6, %v2870_v7  ;;  %v1547_v33 = vcombine.low (!%p1540_p7), %v2868_v6, %v2870_v7 }
  0xed   : > { %1646 = vmatprep.subr.bf16.mxu0 (!%p1540_p7), %v2157_v21  ;;  %1931 = vmatprep.subr.bf16.mxu1 (!%p1540_p7), %v1930_v31  ;;  %v741_v41 = vld [vmem:[#allocation8 + $0xa8] sm:$0xff] (!%p1540_p7)  ;;  %v2165_v42 = vld [vmem:[#allocation6 + $0x70] sm:$0xff] (!%p1540_p7)   ;;  %v1936_v43 = vpack.c.bf16 (!%p1540_p7), %v723_v38, %v722_v37  ;;  %v724_v45 = vld [vmem:[#allocation8 + $0x20] sm:$0xff] (!%p1540_p7)  ;;  %v1545_v31 = vcombine.low (!%p1540_p7), %v2864_v4, %v2866_v5  ;;  %v1550_v34 = vcombine.high (!%p1540_p7), %v2872_v8, %v2874_v9 }
  0xee   : > { %1933 = vmatpush3.bf16.msra.mxu1 %v1932_v35  ;;  %v1938_v44 = vpack.c.bf16 %v741_v41, %v740_v39  ;;  %v725_v46 = vld [vmem:[#allocation8 + $0x28] sm:$0xff]  ;;  %v742_v47 = vld [vmem:[#allocation8 + $0xb0] sm:$0xff]  ;;  %v743_v48 = vld [vmem:[#allocation8 + $0xb8] sm:$0xff]  ;;  %v1549_v35 = vcombine.low %v2872_v8, %v2874_v9  ;;  %v1551_v37 = vcombine.low %v2876_v10, %v2878_v11  ;;  %v1554_v38 = vcombine.high %v2880_v12, %v2882_v13 }
  0xef   : > { %1935 = vmatprep.subr.bf16.mxu1 %v1934_v36  ;;  %v2166_v49 = vld [vmem:[#allocation6 + $0x30] sm:$0xff]   ;;  %v2167_v50 = vld [vmem:[#allocation6 + $0x78] sm:$0xff]   ;;  %v1940_v51 = vpack.c.bf16 %v725_v46, %v724_v45  ;;  %v1942_v52 = vpack.c.bf16 %v743_v48, %v742_v47  ;;  %v744_v55 = vld [vmem:[#allocation8 + $0xc0] sm:$0xff]  ;;  %v1552_v36 = vcombine.high %v2876_v10, %v2878_v11  ;;  %v1553_v39 = vcombine.low %v2880_v12, %v2882_v13 }
  0xf0   : > { %1647 = vmatpush3.bf16.msra.mxu0 %v2158_v22  ;;  %v726_v53 = vld [vmem:[#allocation8 + $0x30] sm:$0xff]  ;;  %v727_v54 = vld [vmem:[#allocation8 + $0x38] sm:$0xff]  ;;  %v745_v56 = vld [vmem:[#allocation8 + $0xc8] sm:$0xff]  ;;  %v1555_v41 = vcombine.low %v2884_v14, %v2886_v15 }
  0xf1   : > { %1648 = vmatprep.subr.bf16.mxu0 %v2159_v23  ;;  %v2168_v57 = vld [vmem:[#allocation6 + $0x38] sm:$0xff]   ;;  %v1944_v58 = vpack.c.bf16 %v727_v54, %v726_v53  ;;  %v1946_v59 = vpack.c.bf16 %v745_v56, %v744_v55  ;;  %v728_v60 = vld [vmem:[#allocation8 + $0x40] sm:$0xff]  ;;  %v729_v61 = vld [vmem:[#allocation8 + $0x48] sm:$0xff] }
  0xf2   : > { %1937 = vmatpush3.bf16.msra.mxu1 %v1936_v43  ;;  %v746_v63 = vld [vmem:[#allocation8 + $0xd0] sm:$0xff]  ;;  %v747_v16 = vld [vmem:[#allocation8 + $0xd8] sm:$0xff]  ;;  %v1948_v18 = vpack.c.bf16 %v729_v61, %v728_v60  ;;  %v748_v22 = vld [vmem:[#allocation8 + $0xe0] sm:$0xff] }
  0xf3   : > { %1939 = vmatprep.subr.bf16.mxu1 %v1938_v44  ;;  %v1950_v19 = vpack.c.bf16 %v747_v16, %v746_v63  ;;  %v730_v20 = vld [vmem:[#allocation8 + $0x50] sm:$0xff]  ;;  %v731_v21 = vld [vmem:[#allocation8 + $0x58] sm:$0xff]  ;;  %v749_v23 = vld [vmem:[#allocation8 + $0xe8] sm:$0xff] }
  0xf4   : > { %1649 = vmatpush3.bf16.msra.mxu0 %v2160_v24  ;;  %v1952_v24 = vpack.c.bf16 %v731_v21, %v730_v20  ;;  %v751_v43 = vld [vmem:[#allocation8 + $0xf8] sm:$0xff]  ;;  %v734_v45 = vld [vmem:[#allocation8 + $0x70] sm:$0xff]  ;;  %v1604_v48 = vld [vmem:[%s2924_s15] sm:$0xff]  }
  0xf5   : > { %1650 = vmatprep.subr.bf16.mxu0 %v2161_v25  ;;  %v1954_v25 = vpack.c.bf16 %v749_v23, %v748_v22  ;;  %v735_v46 = vld [vmem:[#allocation8 + $0x78] sm:$0xff]  ;;  %v1606_v56 = vunpack.c.h.bf16 %v1604_v48 }
  0xf6   : > { %1941 = vmatpush3.bf16.msra.mxu1 %v1940_v51  ;;  %v1960_v47 = vpack.c.bf16 %v735_v46, %v734_v45  ;;  %v1605_v51 = vunpack.c.l.bf16 %v1604_v48  ;;  %v1639_v45 = vld [vmem:[%s2924_s15 + $0x28] sm:$0xff]  }
  0xf7   : > { %1943 = vmatprep.subr.bf16.mxu1 %v1942_v52  ;;  %v1625_v48 = vunpack.c.l.bf16 %v1639_v45 }
  0xf8   : > { %1651 = vmatpush3.bf16.msra.mxu0 %v2162_v26  ;;  %v732_v26 = vld [vmem:[#allocation8 + $0x60] sm:$0xff] }
  0xf9   : > { %1652 = vmatprep.subr.bf16.mxu0 %v2163_v27  ;;  %v733_v27 = vld [vmem:[#allocation8 + $0x68] sm:$0xff] }
  0xfa   : > { %1945 = vmatpush3.bf16.msra.mxu1 %v1944_v58  ;;  %v1956_v30 = vpack.c.bf16 %v733_v27, %v732_v26  ;;  %v1637_v27 = vld [vmem:[%s2924_s15 + $0x18] sm:$0xff]  }
  0xfb   : > { %1947 = vmatprep.subr.bf16.mxu1 %v1946_v59 }
  0xfc   : > { %1653 = vmatpush3.bf16.msra.mxu0 %v2164_v40  ;;  %v1556_v40 = vcombine.high %v2884_v14, %v2886_v15 }
  0xfd   : > { %1654 = vmatprep.subr.bf16.mxu0 %v2165_v42  ;;  %v750_v42 = vld [vmem:[#allocation8 + $0xf0] sm:$0xff] }
  0xfe   : > { %1949 = vmatpush3.bf16.msra.mxu1 %v1948_v18  ;;  %v1958_v44 = vpack.c.bf16 %v751_v43, %v750_v42  ;;  %v1636_v18 = vld [vmem:[%s2924_s15 + $0x10] sm:$0xff]  }
  0xff   : > { %1951 = vmatprep.subr.bf16.mxu1 %v1950_v19  ;;  %v1613_v21 = vunpack.c.l.bf16 %v1636_v18  ;;  %v1614_v26 = vunpack.c.h.bf16 %v1636_v18 }
 0x100   : > { %1655 = vmatpush3.bf16.msra.mxu0 %v2166_v49 }
 0x101   : > { %1656 = vmatprep.subr.bf16.mxu0 %v2167_v50 }
 0x102   : > { %1953 = vmatpush3.bf16.msra.mxu1 %v1952_v24 }
 0x103   : > { %1955 = vmatprep.subr.bf16.mxu1 %v1954_v25 }
 0x104   : > { %1657 = vmatpush3.bf16.msra.mxu0 %v2168_v57  ;;  %v1635_v57 = vld [vmem:[%s2924_s15 + $0x8] sm:$0xff]  }
 0x105   : > { %v1609_v60 = vunpack.c.l.bf16 %v1635_v57 }
 0x106   : > { %1957 = vmatpush3.bf16.msra.mxu1 %v1956_v30  ;;  %v1617_v30 = vunpack.c.l.bf16 %v1637_v27 }
 0x107   : > { %620 = vmatmul.mubr.bf16.vlgmr.msra.gmra.mrb[0].mxu0 %v1541_v62  ;;  %1959 = vmatprep.subr.bf16.mxu1 %v1958_v44 }
 0x108   : > { %627 = vmatprep.mubr.bf16.mxu0 %v1544_v17  ;;  %v1610_v17 = vunpack.c.h.bf16 %v1635_v57 }
 0x10a   : > { %1961 = vmatpush3.bf16.msra.mxu1 %v1960_v47 }
 0x10f   : > { %628 = vmatmul.mubr.bf16.gmra.mrb[4].mxu0 %v1543_v28 }
 0x110   : > { %635 = vmatprep.mubr.bf16.mxu0 %v1546_v29 }
 0x117   : > { %636 = vmatmul.mubr.bf16.gmra.mrb[8].mxu0 %v1545_v31 }
 0x118   : > { %643 = vmatprep.mubr.bf16.mxu0 %v1548_v32 }
 0x11f   : > { %644 = vmatmul.mubr.bf16.gmra.mrb[12].mxu0 %v1547_v33 }
 0x120   : > { %651 = vmatprep.mubr.bf16.mxu0 %v1550_v34 }
 0x127   : > { %652 = vmatmul.mubr.bf16.gmra.mrb[16].mxu0 %v1549_v35  ;;  %v1618_v35 = vunpack.c.h.bf16 %v1637_v27  ;;  %v2934_v27 = vld [vmem:[#allocation9] ss:$0 sm:$0xff] }
 0x128   : > { %659 = vmatprep.mubr.bf16.mxu0 %v1552_v36  ;;  %v1638_v36 = vld [vmem:[%s2924_s15 + $0x20] sm:$0xff]  }
 0x129   : > { %v1622_v44 = vunpack.c.h.bf16 %v1638_v36 }
 0x12f   : > { %660 = vmatmul.mubr.bf16.gmra.mrb[20].mxu0 %v1551_v37 }
 0x130   : > { %667 = vmatprep.mubr.bf16.mxu0 %v1554_v38 }
 0x137   : > { %668 = vmatmul.mubr.bf16.gmra.mrb[24].mxu0 %v1553_v39  ;;  %v1621_v39 = vunpack.c.l.bf16 %v1638_v36 }
 0x138   : > { %675 = vmatprep.mubr.bf16.mxu0 %v1556_v40 }
 0x13f   : > { %676 = vmatmul.mubr.bf16.gmra.mrb[28].mxu0 %v1555_v41 }
 0x1da   : > { %v1658_v49 = vpop.f32.mrb[0].mxu0 }
 0x1db   : > { %v1659_v50 = vpop.f32.mrb[1].mxu0 }
 0x1dc   : > { %v1661_v52 = vpop.f32.mrb[2].mxu0  ;;  %v1660_v53 = vadd.f32 %v1659_v50, %v1658_v49 }
 0x1dd   : > { %v1662_v54 = vpop.f32.mrb[3].mxu0 }
 0x1de   : > { %v1663_v55 = vadd.f32 %v1662_v54, %v1661_v52  ;;  %823 = vmatprep.mubr.f32.mxu1 %v1660_v53  ;;  %v1626_v53 = vunpack.c.h.bf16 %v1639_v45  ;;  %v1640_v54 = vld [vmem:[%s2924_s15 + $0x30] sm:$0xff]  }
 0x1df   : > { %824 = vmatmul.mubr.f32.vlgmr.msra.gmra.mrb[0].mxu1 %v1605_v51  ;;  %v1629_v57 = vunpack.c.l.bf16 %v1640_v54 }
 0x1e0   : > { %828 = vmatprep.mubr.f32.mxu1 %v1663_v55 }
 0x1e2   : > { %v1664_v58 = vpop.f32.mrb[4].mxu0 }
 0x1e3   : > { %v1665_v59 = vpop.f32.mrb[5].mxu0  ;;  %829 = vmatmul.mubr.f32.gmra.mrb[2].mxu1 %v1606_v56 }
 0x1e4   : > { %v1666_v61 = vadd.f32 %v1665_v59, %v1664_v58  ;;  %v1667_v62 = vpop.f32.mrb[6].mxu0 }
 0x1e5   : > { %v1668_v63 = vpop.f32.mrb[7].mxu0 }
 0x1e6   : > { %v1669_v16 = vadd.f32 %v1668_v63, %v1667_v62  ;;  %833 = vmatprep.mubr.f32.mxu1 %v1666_v61  ;;  %v1630_v62 = vunpack.c.h.bf16 %v1640_v54  ;;  %v1641_v63 = vld [vmem:[%s2924_s15 + $0x38] sm:$0xff]  }
 0x1e7   : > { %834 = vmatmul.mubr.f32.gmra.mrb[4].mxu1 %v1609_v60  ;;  %v1633_v18 = vunpack.c.l.bf16 %v1641_v63 }
 0x1e8   : > { %838 = vmatprep.mubr.f32.mxu1 %v1669_v16 }
 0x1ea   : > { %v1670_v19 = vpop.f32.mrb[8].mxu0 }
 0x1eb   : > { %v1671_v20 = vpop.f32.mrb[9].mxu0  ;;  %839 = vmatmul.mubr.f32.gmra.mrb[6].mxu1 %v1610_v17 }
 0x1ec   : > { %v1672_v22 = vadd.f32 %v1671_v20, %v1670_v19  ;;  %v1673_v23 = vpop.f32.mrb[10].mxu0 }
 0x1ed   : > { %v1674_v24 = vpop.f32.mrb[11].mxu0 }
 0x1ee   : > { %v1675_v25 = vadd.f32 %v1674_v24, %v1673_v23  ;;  %843 = vmatprep.mubr.f32.mxu1 %v1672_v22  ;;  %v1634_v23 = vunpack.c.h.bf16 %v1641_v63 }
 0x1ef   : > { %844 = vmatmul.mubr.f32.gmra.mrb[8].mxu1 %v1613_v21 }
 0x1f0   : > { %848 = vmatprep.mubr.f32.mxu1 %v1675_v25 }
 0x1f2   : > { %v1676_v28 = vpop.f32.mrb[12].mxu0 }
 0x1f3   : > { %v1677_v29 = vpop.f32.mrb[13].mxu0  ;;  %849 = vmatmul.mubr.f32.gmra.mrb[10].mxu1 %v1614_v26 }
 0x1f4   : > { %v1678_v31 = vadd.f32 %v1677_v29, %v1676_v28  ;;  %v1679_v32 = vpop.f32.mrb[14].mxu0 }
 0x1f5   : > { %v1680_v33 = vpop.f32.mrb[15].mxu0 }
 0x1f6   : > { %v1681_v34 = vadd.f32 %v1680_v33, %v1679_v32  ;;  %853 = vmatprep.mubr.f32.mxu1 %v1678_v31 }
 0x1f7   : > { %854 = vmatmul.mubr.f32.gmra.mrb[12].mxu1 %v1617_v30 }
 0x1f8   : > { %858 = vmatprep.mubr.f32.mxu1 %v1681_v34 }
 0x1fa   : > { %v1682_v37 = vpop.f32.mrb[16].mxu0 }
 0x1fb   : > { %v1683_v38 = vpop.f32.mrb[17].mxu0  ;;  %859 = vmatmul.mubr.f32.gmra.mrb[14].mxu1 %v1618_v35 }
 0x1fc   : > { %v1684_v40 = vadd.f32 %v1683_v38, %v1682_v37  ;;  %v1685_v41 = vpop.f32.mrb[18].mxu0 }
 0x1fd   : > { %v1686_v42 = vpop.f32.mrb[19].mxu0 }
 0x1fe   : > { %v1687_v43 = vadd.f32 %v1686_v42, %v1685_v41  ;;  %863 = vmatprep.mubr.f32.mxu1 %v1684_v40 }
 0x1ff   : > { %864 = vmatmul.mubr.f32.gmra.mrb[16].mxu1 %v1621_v39 }
 0x200   : > { %868 = vmatprep.mubr.f32.mxu1 %v1687_v43 }
 0x202   : > { %v1688_v46 = vpop.f32.mrb[20].mxu0 }
 0x203   : > { %v1689_v47 = vpop.f32.mrb[21].mxu0  ;;  %869 = vmatmul.mubr.f32.gmra.mrb[18].mxu1 %v1622_v44 }
 0x204   : > { %v1690_v49 = vadd.f32 %v1689_v47, %v1688_v46  ;;  %v1691_v50 = vpop.f32.mrb[22].mxu0 }
 0x205   : > { %v1692_v51 = vpop.f32.mrb[23].mxu0 }
 0x206   : > { %v1693_v52 = vadd.f32 %v1692_v51, %v1691_v50  ;;  %873 = vmatprep.mubr.f32.mxu1 %v1690_v49 }
 0x207   : > { %874 = vmatmul.mubr.f32.gmra.mrb[20].mxu1 %v1625_v48 }
 0x208   : > { %878 = vmatprep.mubr.f32.mxu1 %v1693_v52 }
 0x20a   : > { %v1694_v55 = vpop.f32.mrb[24].mxu0 }
 0x20b   : > { %v1695_v56 = vpop.f32.mrb[25].mxu0  ;;  %879 = vmatmul.mubr.f32.gmra.mrb[22].mxu1 %v1626_v53 }
 0x20c   : > { %v1696_v58 = vadd.f32 %v1695_v56, %v1694_v55  ;;  %v1697_v59 = vpop.f32.mrb[26].mxu0 }
 0x20d   : > { %v1698_v60 = vpop.f32.mrb[27].mxu0 }
 0x20e   : > { %v1699_v61 = vadd.f32 %v1698_v60, %v1697_v59  ;;  %883 = vmatprep.mubr.f32.mxu1 %v1696_v58 }
 0x20f   : > { %884 = vmatmul.mubr.f32.gmra.mrb[24].mxu1 %v1629_v57 }
 0x210   : > { %888 = vmatprep.mubr.f32.mxu1 %v1699_v61 }
 0x212   : > { %v1700_v16 = vpop.f32.mrb[28].mxu0 }
 0x213   : > { %v1701_v17 = vpop.f32.mrb[29].mxu0  ;;  %889 = vmatmul.mubr.f32.gmra.mrb[26].mxu1 %v1630_v62 }
 0x214   : > { %v1702_v19 = vadd.f32 %v1701_v17, %v1700_v16  ;;  %v1703_v20 = vpop.f32.mrb[30].mxu0 }
 0x215   : > { %v1704_v21 = vpop.f32.mrb[31].mxu0 }
 0x216   : > { %v1705_v22 = vadd.f32 %v1704_v21, %v1703_v20  ;;  %893 = vmatprep.mubr.f32.mxu1 %v1702_v19 }
 0x217   : > { %894 = vmatmul.mubr.f32.gmra.mrb[28].mxu1 %v1633_v18 }
 0x218   : > { %898 = vmatprep.mubr.f32.mxu1 %v1705_v22 }
 0x21b   : > { %899 = vmatmul.mubr.f32.gmra.mrb[30].mxu1 %v1634_v23 }
 0x2b2   : > { %v1738_v24 = vpop.f32.mrb[0].mxu1 }
 0x2b3   : > { %v1739_v25 = vpop.f32.mrb[1].mxu1 }
 0x2b4   : > { %v1740_v26 = vadd.f32 %v1739_v25, %v1738_v24 }
 0x2b6   : > { %v1741_v28 = vpop.f32.mrb[2].mxu1  ;;  %v826_v30 = vadd.f32 %v1740_v26, %v2934_v27 }
 0x2b7   : > { %v1742_v29 = vpop.f32.mrb[3].mxu1 }
 0x2b8   : > { %v1743_v31 = vadd.f32 %v1742_v29, %v1741_v28  ;;  %v904_v35 = vmax.f32 %v826_v30, 0.0 }
 0x2ba   : > { %v831_v32 = vadd.f32 %v1743_v31, %v2934_v27  ;;  %v1744_v33 = vpop.f32.mrb[4].mxu1 }
 0x2bb   : > { %v1745_v34 = vpop.f32.mrb[5].mxu1 }
 0x2bc   : > { %v905_v36 = vmax.f32 %v831_v32, 0.0  ;;  %v1746_v37 = vadd.f32 %v1745_v34, %v1744_v33 }
 0x2be   : > { %v920_v38 = vpack.c.bf16 %v905_v36, %v904_v35  ;;  %v1747_v39 = vpop.f32.mrb[6].mxu1  ;;  %v836_v41 = vadd.f32 %v1746_v37, %v2934_v27 }
 0x2bf   : > { %v1748_v40 = vpop.f32.mrb[7].mxu1 }
 0x2c0   : > { %932 = vst [vmem:[%s2939_s20] sm:$0xff] %v920_v38  ;;  %v1749_v42 = vadd.f32 %v1748_v40, %v1747_v39  ;;  %v906_v46 = vmax.f32 %v836_v41, 0.0 }
 0x2c2   : > { %v841_v43 = vadd.f32 %v1749_v42, %v2934_v27  ;;  %v1750_v44 = vpop.f32.mrb[8].mxu1 }
 0x2c3   : > { %v1751_v45 = vpop.f32.mrb[9].mxu1 }
 0x2c4   : > { %v907_v47 = vmax.f32 %v841_v43, 0.0  ;;  %v1752_v48 = vadd.f32 %v1751_v45, %v1750_v44 }
 0x2c6   : > { %v921_v49 = vpack.c.bf16 %v907_v47, %v906_v46  ;;  %v1753_v50 = vpop.f32.mrb[10].mxu1  ;;  %v846_v52 = vadd.f32 %v1752_v48, %v2934_v27 }
 0x2c7   : > { %v1754_v51 = vpop.f32.mrb[11].mxu1 }
 0x2c8   : > { %933 = vst [vmem:[%s2939_s20 + $0x8] sm:$0xff] %v921_v49  ;;  %v1755_v53 = vadd.f32 %v1754_v51, %v1753_v50  ;;  %v908_v57 = vmax.f32 %v846_v52, 0.0 }
 0x2ca   : > { %v851_v54 = vadd.f32 %v1755_v53, %v2934_v27  ;;  %v1756_v55 = vpop.f32.mrb[12].mxu1 }
 0x2cb   : > { %v1757_v56 = vpop.f32.mrb[13].mxu1 }
 0x2cc   : > { %v909_v58 = vmax.f32 %v851_v54, 0.0  ;;  %v1758_v59 = vadd.f32 %v1757_v56, %v1756_v55 }
 0x2ce   : > { %v922_v60 = vpack.c.bf16 %v909_v58, %v908_v57  ;;  %v1759_v61 = vpop.f32.mrb[14].mxu1  ;;  %v856_v63 = vadd.f32 %v1758_v59, %v2934_v27 }
 0x2cf   : > { %v1760_v62 = vpop.f32.mrb[15].mxu1 }
 0x2d0   : > { %934 = vst [vmem:[%s2939_s20 + $0x10] sm:$0xff] %v922_v60  ;;  %v1761_v16 = vadd.f32 %v1760_v62, %v1759_v61  ;;  %v910_v20 = vmax.f32 %v856_v63, 0.0 }
 0x2d2   : > { %v861_v17 = vadd.f32 %v1761_v16, %v2934_v27  ;;  %v1762_v18 = vpop.f32.mrb[16].mxu1 }
 0x2d3   : > { %v1763_v19 = vpop.f32.mrb[17].mxu1 }
 0x2d4   : > { %v911_v21 = vmax.f32 %v861_v17, 0.0  ;;  %v1764_v22 = vadd.f32 %v1763_v19, %v1762_v18 }
 0x2d6   : > { %v923_v23 = vpack.c.bf16 %v911_v21, %v910_v20  ;;  %v1765_v24 = vpop.f32.mrb[18].mxu1  ;;  %v866_v26 = vadd.f32 %v1764_v22, %v2934_v27 }
 0x2d7   : > { %v1766_v25 = vpop.f32.mrb[19].mxu1 }
 0x2d8   : > { %935 = vst [vmem:[%s2939_s20 + $0x18] sm:$0xff] %v923_v23  ;;  %v1767_v28 = vadd.f32 %v1766_v25, %v1765_v24  ;;  %v912_v32 = vmax.f32 %v866_v26, 0.0 }
 0x2da   : > { %v871_v29 = vadd.f32 %v1767_v28, %v2934_v27  ;;  %v1768_v30 = vpop.f32.mrb[20].mxu1 }
 0x2db   : > { %v1769_v31 = vpop.f32.mrb[21].mxu1 }
 0x2dc   : > { %v913_v33 = vmax.f32 %v871_v29, 0.0  ;;  %v1770_v34 = vadd.f32 %v1769_v31, %v1768_v30 }
 0x2de   : > { %v924_v35 = vpack.c.bf16 %v913_v33, %v912_v32  ;;  %v1771_v36 = vpop.f32.mrb[22].mxu1  ;;  %v876_v38 = vadd.f32 %v1770_v34, %v2934_v27 }
 0x2df   : > { %v1772_v37 = vpop.f32.mrb[23].mxu1 }
 0x2e0   : > { %936 = vst [vmem:[%s2939_s20 + $0x20] sm:$0xff] %v924_v35  ;;  %v1773_v39 = vadd.f32 %v1772_v37, %v1771_v36  ;;  %v914_v43 = vmax.f32 %v876_v38, 0.0 }
 0x2e2   : > { %v881_v40 = vadd.f32 %v1773_v39, %v2934_v27  ;;  %v1774_v41 = vpop.f32.mrb[24].mxu1 }
 0x2e3   : > { %v1775_v42 = vpop.f32.mrb[25].mxu1 }
 0x2e4   : > { %v915_v44 = vmax.f32 %v881_v40, 0.0  ;;  %v1776_v45 = vadd.f32 %v1775_v42, %v1774_v41 }
 0x2e6   : > { %v925_v46 = vpack.c.bf16 %v915_v44, %v914_v43  ;;  %v1777_v47 = vpop.f32.mrb[26].mxu1  ;;  %v886_v49 = vadd.f32 %v1776_v45, %v2934_v27 }
 0x2e7   : > { %v1778_v48 = vpop.f32.mrb[27].mxu1 }
 0x2e8   : > { %937 = vst [vmem:[%s2939_s20 + $0x28] sm:$0xff] %v925_v46  ;;  %v1779_v50 = vadd.f32 %v1778_v48, %v1777_v47  ;;  %v916_v54 = vmax.f32 %v886_v49, 0.0 }
 0x2ea   : > { %v891_v51 = vadd.f32 %v1779_v50, %v2934_v27  ;;  %v1780_v52 = vpop.f32.mrb[28].mxu1 }
 0x2eb   : > { %v1781_v53 = vpop.f32.mrb[29].mxu1 }
 0x2ec   : > { %v917_v55 = vmax.f32 %v891_v51, 0.0  ;;  %v1782_v56 = vadd.f32 %v1781_v53, %v1780_v52 }
 0x2ee   : > { %v926_v57 = vpack.c.bf16 %v917_v55, %v916_v54  ;;  %v1783_v58 = vpop.f32.mrb[30].mxu1  ;;  %v896_v60 = vadd.f32 %v1782_v56, %v2934_v27 }
 0x2ef   : > { %v1784_v59 = vpop.f32.mrb[31].mxu1 }
 0x2f0   : > { %938 = vst [vmem:[%s2939_s20 + $0x30] sm:$0xff] %v926_v57  ;;  %v1785_v61 = vadd.f32 %v1784_v59, %v1783_v58  ;;  %v918_v63 = vmax.f32 %v896_v60, 0.0 }
 0x2f2   : > { %v901_v62 = vadd.f32 %v1785_v61, %v2934_v27 }
 0x2f4   : > { %v919_v16 = vmax.f32 %v901_v62, 0.0 }
 0x2f6   : > { %v927_v17 = vpack.c.bf16 %v919_v16, %v918_v63 }
 0x2f8   : > { %939 = vst [vmem:[%s2939_s20 + $0x38] sm:$0xff] %v927_v17 }
 0x2f9 PF: > { %s3162_s17 = sld [smem:[#allocation21_spill]] }
 0x2ff   : > { %p1576_p13 = scmp.ne.s32.totalorder %s3162_s17, 1 }
 0x300   : > { %v952_v18 = vld [vmem:[#allocation2 + $0x40] sm:$0xff] (!%p1576_p13)  ;;  %v953_v20 = vld [vmem:[#allocation2 + $0x48] sm:$0xff] (!%p1576_p13)  ;;  %v1578_v21 = vcombine.high (!%p1576_p13), %v2856_v0, %v2858_v1  ;;  %v954_v27 = vld [vmem:[#allocation2 + $0x50] sm:$0xff] (!%p1576_p13)  ;;  %s1137_s0 = sshra.s32 (!%p1576_p13), %s2852_s11, 4 }
 0x301   : > { %943 = sbr.rel (%p1576_p13) target bundleno = 1295 (0x50f), region = 76  ;;  %v944_v19 = vld [vmem:[#allocation2] sm:$0xff] (!%p1576_p13)  ;;  %1786 = vmatprep.subr.bf16.mxu0 (!%p1576_p13), %v952_v18  ;;  %v945_v22 = vld [vmem:[#allocation2 + $0x8] sm:$0xff] (!%p1576_p13)  ;;  %v946_v23 = vld [vmem:[#allocation2 + $0x10] sm:$0xff] (!%p1576_p13)  ;;  %s1593_s10 = sshll.u32 (!%p1576_p13), %s1137_s0, 3 }
 0x302   : > { %1787 = vmatpush3.bf16.msra.mxu0 (!%p1576_p13), %v944_v19  ;;  %1072 = vmatprep.mubr.bf16.mxu0 (!%p1576_p13), %v1578_v21  ;;  %v1181_v24 = vld [vmem:[#allocation11 + $0x80] sm:$0xff] (!%p1576_p13)  ;;  %v1182_v25 = vld [vmem:[#allocation11 + $0x88] sm:$0xff] (!%p1576_p13)  ;;  %v1183_v30 = vld [vmem:[#allocation11 + $0x90] sm:$0xff] (!%p1576_p13)  ;;  %s2997_s27 = scalar_lea.vmem (!%p1576_p13), [#allocation2], %s1593_s10 }
 0x303   : > { %1788 = vmatprep.subr.bf16.mxu0 (!%p1576_p13), %v953_v20  ;;  %v1962_v26 = vpack.c.bf16 (!%p1576_p13), %v1182_v25, %v1181_v24  ;;  %v1165_v28 = vld [vmem:[#allocation11] sm:$0xff] (!%p1576_p13)  ;;  %v1166_v29 = vld [vmem:[#allocation11 + $0x8] sm:$0xff] (!%p1576_p13)  ;;  %v1184_v32 = vld [vmem:[#allocation11 + $0x98] sm:$0xff] (!%p1576_p13) }
 0x304   : > { %v1964_v31 = vpack.c.bf16 (!%p1576_p13), %v1166_v29, %v1165_v28  ;;  %v1167_v33 = vld [vmem:[#allocation11 + $0x10] sm:$0xff] (!%p1576_p13)  ;;  %v1168_v34 = vld [vmem:[#allocation11 + $0x18] sm:$0xff] (!%p1576_p13)  ;;  %v1966_v36 = vpack.c.bf16 (!%p1576_p13), %v1184_v32, %v1183_v30  ;;  %v1185_v37 = vld [vmem:[#allocation11 + $0xa0] sm:$0xff] (!%p1576_p13)  ;;  %v1577_v28 = vcombine.low (!%p1576_p13), %v2856_v0, %v2858_v1  ;;  %v1580_v30 = vcombine.high (!%p1576_p13), %v2860_v2, %v2862_v3 }
 0x305   : > { %v955_v35 = vld [vmem:[#allocation2 + $0x58] sm:$0xff] (!%p1576_p13)  ;;  %1963 = vmatprep.subr.bf16.mxu1 (!%p1576_p13), %v1962_v26  ;;  %v1186_v38 = vld [vmem:[#allocation11 + $0xa8] sm:$0xff] (!%p1576_p13)  ;;  %v1968_v39 = vpack.c.bf16 (!%p1576_p13), %v1168_v34, %v1167_v33  ;;  %v1169_v41 = vld [vmem:[#allocation11 + $0x20] sm:$0xff] (!%p1576_p13)  ;;  %v1582_v32 = vcombine.high (!%p1576_p13), %v2864_v4, %v2866_v5  ;;  %v1581_v0 = vcombine.low (!%p1576_p13), %v2864_v4, %v2866_v5  ;;  %v1584_v1 = vcombine.high (!%p1576_p13), %v2868_v6, %v2870_v7 }
 0x306   : > { %1789 = vmatpush3.bf16.msra.mxu0 (!%p1576_p13), %v945_v22  ;;  %1965 = vmatpush3.bf16.msra.mxu1 (!%p1576_p13), %v1964_v31  ;;  %v1970_v40 = vpack.c.bf16 (!%p1576_p13), %v1186_v38, %v1185_v37  ;;  %v1170_v42 = vld [vmem:[#allocation11 + $0x28] sm:$0xff] (!%p1576_p13)  ;;  %v947_v43 = vld [vmem:[#allocation2 + $0x18] sm:$0xff] (!%p1576_p13)  ;;  %v956_v46 = vld [vmem:[#allocation2 + $0x60] sm:$0xff] (!%p1576_p13)  ;;  %v1579_v31 = vcombine.low (!%p1576_p13), %v2860_v2, %v2862_v3  ;;  %v1583_v33 = vcombine.low (!%p1576_p13), %v2868_v6, %v2870_v7 }
 0x307   : > { %1790 = vmatprep.subr.bf16.mxu0 (!%p1576_p13), %v954_v27  ;;  %1967 = vmatprep.subr.bf16.mxu1 (!%p1576_p13), %v1966_v36  ;;  %v1187_v44 = vld [vmem:[#allocation11 + $0xb0] sm:$0xff] (!%p1576_p13)  ;;  %v1188_v45 = vld [vmem:[#allocation11 + $0xb8] sm:$0xff] (!%p1576_p13)  ;;  %v1972_v47 = vpack.c.bf16 (!%p1576_p13), %v1170_v42, %v1169_v41  ;;  %v1189_v52 = vld [vmem:[#allocation11 + $0xc0] sm:$0xff] (!%p1576_p13)  ;;  %v1586_v34 = vcombine.high (!%p1576_p13), %v2872_v8, %v2874_v9  ;;  %v1585_v2 = vcombine.low (!%p1576_p13), %v2872_v8, %v2874_v9 }
 0x308   : > { %v1974_v48 = vpack.c.bf16 %v1188_v45, %v1187_v44  ;;  %v1171_v49 = vld [vmem:[#allocation11 + $0x30] sm:$0xff]  ;;  %v1172_v50 = vld [vmem:[#allocation11 + $0x38] sm:$0xff]  ;;  %v1190_v53 = vld [vmem:[#allocation11 + $0xc8] sm:$0xff]  ;;  %v1588_v3 = vcombine.high %v2876_v10, %v2878_v11  ;;  %v1587_v4 = vcombine.low %v2876_v10, %v2878_v11  ;;  %v1590_v5 = vcombine.high %v2880_v12, %v2882_v13 }
 0x309   : > { %v948_v51 = vld [vmem:[#allocation2 + $0x20] sm:$0xff]  ;;  %v957_v54 = vld [vmem:[#allocation2 + $0x68] sm:$0xff]  ;;  %v1976_v55 = vpack.c.bf16 %v1172_v50, %v1171_v49  ;;  %v1978_v56 = vpack.c.bf16 %v1190_v53, %v1189_v52  ;;  %v1191_v60 = vld [vmem:[#allocation11 + $0xd0] sm:$0xff]  ;;  %v1589_v6 = vcombine.low %v2880_v12, %v2882_v13  ;;  %v1592_v7 = vcombine.high %v2884_v14, %v2886_v15 }
 0x30a   : > { %1791 = vmatpush3.bf16.msra.mxu0 %v946_v23  ;;  %1969 = vmatpush3.bf16.msra.mxu1 %v1968_v39  ;;  %v1173_v57 = vld [vmem:[#allocation11 + $0x40] sm:$0xff]  ;;  %v1174_v58 = vld [vmem:[#allocation11 + $0x48] sm:$0xff]  ;;  %v1192_v61 = vld [vmem:[#allocation11 + $0xd8] sm:$0xff]  ;;  %v1591_v8 = vcombine.low %v2884_v14, %v2886_v15 }
 0x30b   : > { %1792 = vmatprep.subr.bf16.mxu0 %v955_v35  ;;  %1971 = vmatprep.subr.bf16.mxu1 %v1970_v40  ;;  %v949_v59 = vld [vmem:[#allocation2 + $0x28] sm:$0xff]  ;;  %v958_v62 = vld [vmem:[#allocation2 + $0x70] sm:$0xff]  ;;  %v1980_v63 = vpack.c.bf16 %v1174_v58, %v1173_v57  ;;  %v1982_v16 = vpack.c.bf16 %v1192_v61, %v1191_v60  ;;  %v1176_v18 = vld [vmem:[#allocation11 + $0x58] sm:$0xff] }
 0x30c   : > { %v1175_v17 = vld [vmem:[#allocation11 + $0x50] sm:$0xff]  ;;  %v1193_v20 = vld [vmem:[#allocation11 + $0xe0] sm:$0xff]  ;;  %v1194_v21 = vld [vmem:[#allocation11 + $0xe8] sm:$0xff] }
 0x30d   : > { %v950_v19 = vld [vmem:[#allocation2 + $0x30] sm:$0xff]  ;;  %v959_v22 = vld [vmem:[#allocation2 + $0x78] sm:$0xff]  ;;  %v1984_v27 = vpack.c.bf16 %v1176_v18, %v1175_v17  ;;  %v1986_v23 = vpack.c.bf16 %v1194_v21, %v1193_v20  ;;  %v1177_v24 = vld [vmem:[#allocation11 + $0x60] sm:$0xff] }
 0x30e   : > { %1793 = vmatpush3.bf16.msra.mxu0 %v947_v43  ;;  %1973 = vmatpush3.bf16.msra.mxu1 %v1972_v47  ;;  %v1178_v25 = vld [vmem:[#allocation11 + $0x68] sm:$0xff]  ;;  %v951_v26 = vld [vmem:[#allocation2 + $0x38] sm:$0xff]  ;;  %v1141_v12 = vld [vmem:[%s2997_s27] sm:$0xff] }
 0x30f   : > { %1794 = vmatprep.subr.bf16.mxu0 %v956_v46  ;;  %1975 = vmatprep.subr.bf16.mxu1 %v1974_v48  ;;  %v1988_v29 = vpack.c.bf16 %v1178_v25, %v1177_v24  ;;  %v1195_v9 = vld [vmem:[#allocation11 + $0xf0] sm:$0xff]  ;;  %v1196_v10 = vld [vmem:[#allocation11 + $0xf8] sm:$0xff]  ;;  %v1149_v39 = vunpack.c.l.bf16 %v1141_v12  ;;  %v1150_v42 = vunpack.c.h.bf16 %v1141_v12  ;;  %v1142_v43 = vld [vmem:[%s2997_s27 + $0x8] sm:$0xff] }
 0x310   : > { %v1990_v11 = vpack.c.bf16 %v1196_v10, %v1195_v9  ;;  %v1179_v35 = vld [vmem:[#allocation11 + $0x70] sm:$0xff]  ;;  %v1180_v36 = vld [vmem:[#allocation11 + $0x78] sm:$0xff]  ;;  %v1151_v46 = vunpack.c.l.bf16 %v1142_v43 }
 0x311   : > { %v1992_v37 = vpack.c.bf16 %v1180_v36, %v1179_v35  ;;  %v1143_v52 = vld [vmem:[%s2997_s27 + $0x10] sm:$0xff]  ;;  %v1144_v61 = vld [vmem:[%s2997_s27 + $0x18] sm:$0xff] }
 0x312   : > { %1795 = vmatpush3.bf16.msra.mxu0 %v948_v51  ;;  %1977 = vmatpush3.bf16.msra.mxu1 %v1976_v55  ;;  %v1152_v51 = vunpack.c.h.bf16 %v1142_v43  ;;  %v1153_v55 = vunpack.c.l.bf16 %v1143_v52  ;;  %v1154_v60 = vunpack.c.h.bf16 %v1143_v52  ;;  %v1156_v21 = vunpack.c.h.bf16 %v1144_v61  ;;  %v3007_v43 = vld [vmem:[#allocation12] ss:$0 sm:$0xff] }
 0x313   : > { %1796 = vmatprep.subr.bf16.mxu0 %v957_v54  ;;  %1979 = vmatprep.subr.bf16.mxu1 %v1978_v56 }
 0x316   : > { %1797 = vmatpush3.bf16.msra.mxu0 %v949_v59  ;;  %1981 = vmatpush3.bf16.msra.mxu1 %v1980_v63 }
 0x317   : > { %1798 = vmatprep.subr.bf16.mxu0 %v958_v62  ;;  %1983 = vmatprep.subr.bf16.mxu1 %v1982_v16  ;;  %v1155_v16 = vunpack.c.l.bf16 %v1144_v61 }
 0x31a   : > { %1799 = vmatpush3.bf16.msra.mxu0 %v950_v19  ;;  %1985 = vmatpush3.bf16.msra.mxu1 %v1984_v27 }
 0x31b   : > { %1800 = vmatprep.subr.bf16.mxu0 %v959_v22  ;;  %1987 = vmatprep.subr.bf16.mxu1 %v1986_v23  ;;  %v1145_v22 = vld [vmem:[%s2997_s27 + $0x20] sm:$0xff] }
 0x31c   : > { %v1157_v24 = vunpack.c.l.bf16 %v1145_v22 }
 0x31e   : > { %1801 = vmatpush3.bf16.msra.mxu0 %v951_v26  ;;  %1989 = vmatpush3.bf16.msra.mxu1 %v1988_v29 }
 0x31f   : > { %1991 = vmatprep.subr.bf16.mxu1 %v1990_v11 }
 0x321   : > { %1073 = vmatmul.mubr.bf16.vlgmr.msra.gmra.mrb[0].mxu0 %v1577_v28 }
 0x322   : > { %1080 = vmatprep.mubr.bf16.mxu0 %v1580_v30  ;;  %1993 = vmatpush3.bf16.msra.mxu1 %v1992_v37  ;;  %v1158_v30 = vunpack.c.h.bf16 %v1145_v22  ;;  %v1148_v37 = vld [vmem:[%s2997_s27 + $0x38] sm:$0xff] }
 0x329   : > { %1081 = vmatmul.mubr.bf16.gmra.mrb[4].mxu0 %v1579_v31  ;;  %v1146_v31 = vld [vmem:[%s2997_s27 + $0x28] sm:$0xff] }
 0x32a   : > { %1088 = vmatprep.mubr.bf16.mxu0 %v1582_v32 }
 0x331   : > { %1089 = vmatmul.mubr.bf16.gmra.mrb[8].mxu0 %v1581_v0 }
 0x332   : > { %1096 = vmatprep.mubr.bf16.mxu0 %v1584_v1  ;;  %v1159_v1 = vunpack.c.l.bf16 %v1146_v31 }
 0x339   : > { %1097 = vmatmul.mubr.bf16.gmra.mrb[12].mxu0 %v1583_v33 }
 0x33a   : > { %1104 = vmatprep.mubr.bf16.mxu0 %v1586_v34 }
 0x341   : > { %1105 = vmatmul.mubr.bf16.gmra.mrb[16].mxu0 %v1585_v2 }
 0x342   : > { %1112 = vmatprep.mubr.bf16.mxu0 %v1588_v3 }
 0x349   : > { %1113 = vmatmul.mubr.bf16.gmra.mrb[20].mxu0 %v1587_v4  ;;  %v1160_v4 = vunpack.c.h.bf16 %v1146_v31 }
 0x34a   : > { %1120 = vmatprep.mubr.bf16.mxu0 %v1590_v5  ;;  %v1147_v5 = vld [vmem:[%s2997_s27 + $0x30] sm:$0xff] }
 0x34b   : > { %v1162_v36 = vunpack.c.h.bf16 %v1147_v5 }
 0x351   : > { %1121 = vmatmul.mubr.bf16.gmra.mrb[24].mxu0 %v1589_v6 }
 0x352   : > { %1128 = vmatprep.mubr.bf16.mxu0 %v1592_v7 }
 0x359   : > { %1129 = vmatmul.mubr.bf16.gmra.mrb[28].mxu0 %v1591_v8  ;;  %v1161_v8 = vunpack.c.l.bf16 %v1147_v5 }
 0x3f4   : > { %v1802_v13 = vpop.f32.mrb[0].mxu0 }
 0x3f5   : > { %v1803_v38 = vpop.f32.mrb[1].mxu0 }
 0x3f6   : > { %v1805_v14 = vpop.f32.mrb[2].mxu0  ;;  %v1804_v15 = vadd.f32 %v1803_v38, %v1802_v13  ;;  %v1163_v38 = vunpack.c.l.bf16 %v1148_v37 }
 0x3f7   : > { %v1806_v40 = vpop.f32.mrb[3].mxu0 }
 0x3f8   : > { %v1807_v41 = vadd.f32 %v1806_v40, %v1805_v14  ;;  %1268 = vmatprep.mubr.f32.mxu1 %v1804_v15 }
 0x3f9   : > { %1269 = vmatmul.mubr.f32.vlgmr.msra.gmra.mrb[0].mxu1 %v1149_v39 }
 0x3fa   : > { %1273 = vmatprep.mubr.f32.mxu1 %v1807_v41  ;;  %v1164_v41 = vunpack.c.h.bf16 %v1148_v37 }
 0x3fc   : > { %v1808_v44 = vpop.f32.mrb[4].mxu0 }
 0x3fd   : > { %v1809_v45 = vpop.f32.mrb[5].mxu0  ;;  %1274 = vmatmul.mubr.f32.gmra.mrb[2].mxu1 %v1150_v42 }
 0x3fe   : > { %v1810_v47 = vadd.f32 %v1809_v45, %v1808_v44  ;;  %v1811_v48 = vpop.f32.mrb[6].mxu0 }
 0x3ff   : > { %v1812_v49 = vpop.f32.mrb[7].mxu0 }
 0x400   : > { %v1813_v50 = vadd.f32 %v1812_v49, %v1811_v48  ;;  %1278 = vmatprep.mubr.f32.mxu1 %v1810_v47 }
 0x401   : > { %1279 = vmatmul.mubr.f32.gmra.mrb[4].mxu1 %v1151_v46 }
 0x402   : > { %1283 = vmatprep.mubr.f32.mxu1 %v1813_v50 }
 0x404   : > { %v1814_v53 = vpop.f32.mrb[8].mxu0 }
 0x405   : > { %v1815_v54 = vpop.f32.mrb[9].mxu0  ;;  %1284 = vmatmul.mubr.f32.gmra.mrb[6].mxu1 %v1152_v51 }
 0x406   : > { %v1816_v56 = vadd.f32 %v1815_v54, %v1814_v53  ;;  %v1817_v57 = vpop.f32.mrb[10].mxu0 }
 0x407   : > { %v1818_v58 = vpop.f32.mrb[11].mxu0 }
 0x408   : > { %v1819_v59 = vadd.f32 %v1818_v58, %v1817_v57  ;;  %1288 = vmatprep.mubr.f32.mxu1 %v1816_v56 }
 0x409   : > { %1289 = vmatmul.mubr.f32.gmra.mrb[8].mxu1 %v1153_v55 }
 0x40a   : > { %1293 = vmatprep.mubr.f32.mxu1 %v1819_v59 }
 0x40c   : > { %v1820_v62 = vpop.f32.mrb[12].mxu0 }
 0x40d   : > { %v1821_v63 = vpop.f32.mrb[13].mxu0  ;;  %1294 = vmatmul.mubr.f32.gmra.mrb[10].mxu1 %v1154_v60 }
 0x40e   : > { %v1822_v17 = vadd.f32 %v1821_v63, %v1820_v62  ;;  %v1823_v18 = vpop.f32.mrb[14].mxu0 }
 0x40f   : > { %v1824_v19 = vpop.f32.mrb[15].mxu0 }
 0x410   : > { %v1825_v20 = vadd.f32 %v1824_v19, %v1823_v18  ;;  %1298 = vmatprep.mubr.f32.mxu1 %v1822_v17 }
 0x411   : > { %1299 = vmatmul.mubr.f32.gmra.mrb[12].mxu1 %v1155_v16 }
 0x412   : > { %1303 = vmatprep.mubr.f32.mxu1 %v1825_v20 }
 0x414   : > { %v1826_v27 = vpop.f32.mrb[16].mxu0 }
 0x415   : > { %v1827_v23 = vpop.f32.mrb[17].mxu0  ;;  %1304 = vmatmul.mubr.f32.gmra.mrb[14].mxu1 %v1156_v21 }
 0x416   : > { %v1828_v25 = vadd.f32 %v1827_v23, %v1826_v27  ;;  %v1829_v26 = vpop.f32.mrb[18].mxu0 }
 0x417   : > { %v1830_v28 = vpop.f32.mrb[19].mxu0 }
 0x418   : > { %v1831_v29 = vadd.f32 %v1830_v28, %v1829_v26  ;;  %1308 = vmatprep.mubr.f32.mxu1 %v1828_v25 }
 0x419   : > { %1309 = vmatmul.mubr.f32.gmra.mrb[16].mxu1 %v1157_v24 }
 0x41a   : > { %1313 = vmatprep.mubr.f32.mxu1 %v1831_v29 }
 0x41c   : > { %v1832_v32 = vpop.f32.mrb[20].mxu0 }
 0x41d   : > { %v1833_v0 = vpop.f32.mrb[21].mxu0  ;;  %1314 = vmatmul.mubr.f32.gmra.mrb[18].mxu1 %v1158_v30 }
 0x41e   : > { %v1834_v33 = vadd.f32 %v1833_v0, %v1832_v32  ;;  %v1835_v34 = vpop.f32.mrb[22].mxu0 }
 0x41f   : > { %v1836_v2 = vpop.f32.mrb[23].mxu0 }
 0x420   : > { %v1837_v3 = vadd.f32 %v1836_v2, %v1835_v34  ;;  %1318 = vmatprep.mubr.f32.mxu1 %v1834_v33 }
 0x421   : > { %1319 = vmatmul.mubr.f32.gmra.mrb[20].mxu1 %v1159_v1 }
 0x422   : > { %1323 = vmatprep.mubr.f32.mxu1 %v1837_v3 }
 0x424   : > { %v1838_v6 = vpop.f32.mrb[24].mxu0 }
 0x425   : > { %v1839_v7 = vpop.f32.mrb[25].mxu0  ;;  %1324 = vmatmul.mubr.f32.gmra.mrb[22].mxu1 %v1160_v4 }
 0x426   : > { %v1840_v9 = vadd.f32 %v1839_v7, %v1838_v6  ;;  %v1841_v10 = vpop.f32.mrb[26].mxu0 }
 0x427   : > { %v1842_v11 = vpop.f32.mrb[27].mxu0 }
 0x428   : > { %v1843_v35 = vadd.f32 %v1842_v11, %v1841_v10  ;;  %1328 = vmatprep.mubr.f32.mxu1 %v1840_v9 }
 0x429   : > { %1329 = vmatmul.mubr.f32.gmra.mrb[24].mxu1 %v1161_v8 }
 0x42a   : > { %1333 = vmatprep.mubr.f32.mxu1 %v1843_v35 }
 0x42c   : > { %v1844_v12 = vpop.f32.mrb[28].mxu0 }
 0x42d   : > { %v1845_v13 = vpop.f32.mrb[29].mxu0  ;;  %1334 = vmatmul.mubr.f32.gmra.mrb[26].mxu1 %v1162_v36 }
 0x42e   : > { %v1846_v39 = vadd.f32 %v1845_v13, %v1844_v12  ;;  %v1847_v14 = vpop.f32.mrb[30].mxu0 }
 0x42f   : > { %v1848_v15 = vpop.f32.mrb[31].mxu0 }
 0x430   : > { %v1849_v40 = vadd.f32 %v1848_v15, %v1847_v14  ;;  %1338 = vmatprep.mubr.f32.mxu1 %v1846_v39 }
 0x431   : > { %1339 = vmatmul.mubr.f32.gmra.mrb[28].mxu1 %v1163_v38 }
 0x432   : > { %1343 = vmatprep.mubr.f32.mxu1 %v1849_v40 }
 0x435   : > { %1344 = vmatmul.mubr.f32.gmra.mrb[30].mxu1 %v1164_v41 }
 0x4cc   : > { %v1882_v42 = vpop.f32.mrb[0].mxu1 }
 0x4cd   : > { %v1883_v44 = vpop.f32.mrb[1].mxu1 }
 0x4ce   : > { %v1884_v45 = vadd.f32 %v1883_v44, %v1882_v42 }
 0x4d0   : > { %v1271_v46 = vadd.f32 %v1884_v45, %v3007_v43  ;;  %v1885_v47 = vpop.f32.mrb[2].mxu1 }
 0x4d1   : > { %v1886_v48 = vpop.f32.mrb[3].mxu1 }
 0x4d2   : > { %1349 = vst [vmem:[%s2888_s9] sm:$0xff] %v1271_v46  ;;  %v1887_v49 = vadd.f32 %v1886_v48, %v1885_v47 }
 0x4d4   : > { %v1276_v50 = vadd.f32 %v1887_v49, %v3007_v43  ;;  %v1888_v51 = vpop.f32.mrb[4].mxu1 }
 0x4d5   : > { %v1889_v52 = vpop.f32.mrb[5].mxu1 }
 0x4d6   : > { %1350 = vst [vmem:[%s2888_s9 + $0x8] sm:$0xff] %v1276_v50  ;;  %v1890_v53 = vadd.f32 %v1889_v52, %v1888_v51 }
 0x4d8   : > { %v1281_v54 = vadd.f32 %v1890_v53, %v3007_v43  ;;  %v1891_v55 = vpop.f32.mrb[6].mxu1 }
 0x4d9   : > { %v1892_v56 = vpop.f32.mrb[7].mxu1 }
 0x4da   : > { %1351 = vst [vmem:[%s2888_s9 + $0x10] sm:$0xff] %v1281_v54  ;;  %v1893_v57 = vadd.f32 %v1892_v56, %v1891_v55 }
 0x4dc   : > { %v1286_v58 = vadd.f32 %v1893_v57, %v3007_v43  ;;  %v1894_v59 = vpop.f32.mrb[8].mxu1 }
 0x4dd   : > { %v1895_v60 = vpop.f32.mrb[9].mxu1 }
 0x4de   : > { %1352 = vst [vmem:[%s2888_s9 + $0x18] sm:$0xff] %v1286_v58  ;;  %v1896_v61 = vadd.f32 %v1895_v60, %v1894_v59 }
 0x4e0   : > { %v1291_v62 = vadd.f32 %v1896_v61, %v3007_v43  ;;  %v1897_v63 = vpop.f32.mrb[10].mxu1 }
 0x4e1   : > { %v1898_v16 = vpop.f32.mrb[11].mxu1 }
 0x4e2   : > { %1353 = vst [vmem:[%s2888_s9 + $0x20] sm:$0xff] %v1291_v62  ;;  %v1899_v17 = vadd.f32 %v1898_v16, %v1897_v63 }
 0x4e4   : > { %v1296_v18 = vadd.f32 %v1899_v17, %v3007_v43  ;;  %v1900_v19 = vpop.f32.mrb[12].mxu1 }
 0x4e5   : > { %v1901_v20 = vpop.f32.mrb[13].mxu1 }
 0x4e6   : > { %1354 = vst [vmem:[%s2888_s9 + $0x28] sm:$0xff] %v1296_v18  ;;  %v1902_v21 = vadd.f32 %v1901_v20, %v1900_v19 }
 0x4e8   : > { %v1301_v22 = vadd.f32 %v1902_v21, %v3007_v43  ;;  %v1903_v27 = vpop.f32.mrb[14].mxu1 }
 0x4e9   : > { %v1904_v23 = vpop.f32.mrb[15].mxu1 }
 0x4ea   : > { %1355 = vst [vmem:[%s2888_s9 + $0x30] sm:$0xff] %v1301_v22  ;;  %v1905_v24 = vadd.f32 %v1904_v23, %v1903_v27 }
 0x4ec   : > { %v1306_v25 = vadd.f32 %v1905_v24, %v3007_v43  ;;  %v1906_v26 = vpop.f32.mrb[16].mxu1 }
 0x4ed   : > { %v1907_v28 = vpop.f32.mrb[17].mxu1 }
 0x4ee   : > { %1356 = vst [vmem:[%s2888_s9 + $0x38] sm:$0xff] %v1306_v25  ;;  %v1908_v29 = vadd.f32 %v1907_v28, %v1906_v26 }
 0x4f0   : > { %v1311_v30 = vadd.f32 %v1908_v29, %v3007_v43  ;;  %v1909_v31 = vpop.f32.mrb[18].mxu1 }
 0x4f1   : > { %v1910_v32 = vpop.f32.mrb[19].mxu1 }
 0x4f2   : > { %1357 = vst [vmem:[%s2888_s9 + $0x40] sm:$0xff] %v1311_v30  ;;  %v1911_v0 = vadd.f32 %v1910_v32, %v1909_v31 }
 0x4f4   : > { %v1316_v1 = vadd.f32 %v1911_v0, %v3007_v43  ;;  %v1912_v33 = vpop.f32.mrb[20].mxu1 }
 0x4f5   : > { %v1913_v34 = vpop.f32.mrb[21].mxu1 }
 0x4f6   : > { %1358 = vst [vmem:[%s2888_s9 + $0x48] sm:$0xff] %v1316_v1  ;;  %v1914_v2 = vadd.f32 %v1913_v34, %v1912_v33 }
 0x4f8   : > { %v1321_v3 = vadd.f32 %v1914_v2, %v3007_v43  ;;  %v1915_v4 = vpop.f32.mrb[22].mxu1 }
 0x4f9   : > { %v1916_v5 = vpop.f32.mrb[23].mxu1 }
 0x4fa   : > { %1359 = vst [vmem:[%s2888_s9 + $0x50] sm:$0xff] %v1321_v3  ;;  %v1917_v6 = vadd.f32 %v1916_v5, %v1915_v4 }
 0x4fc   : > { %v1326_v7 = vadd.f32 %v1917_v6, %v3007_v43  ;;  %v1918_v8 = vpop.f32.mrb[24].mxu1 }
 0x4fd   : > { %v1919_v9 = vpop.f32.mrb[25].mxu1 }
 0x4fe   : > { %1360 = vst [vmem:[%s2888_s9 + $0x58] sm:$0xff] %v1326_v7  ;;  %v1920_v10 = vadd.f32 %v1919_v9, %v1918_v8 }
 0x500   : > { %v1331_v11 = vadd.f32 %v1920_v10, %v3007_v43  ;;  %v1921_v35 = vpop.f32.mrb[26].mxu1 }
 0x501   : > { %v1922_v36 = vpop.f32.mrb[27].mxu1 }
 0x502   : > { %1361 = vst [vmem:[%s2888_s9 + $0x60] sm:$0xff] %v1331_v11  ;;  %v1923_v37 = vadd.f32 %v1922_v36, %v1921_v35 }
 0x504   : > { %v1336_v12 = vadd.f32 %v1923_v37, %v3007_v43  ;;  %v1924_v13 = vpop.f32.mrb[28].mxu1 }
 0x505   : > { %v1925_v38 = vpop.f32.mrb[29].mxu1 }
 0x506   : > { %1362 = vst [vmem:[%s2888_s9 + $0x68] sm:$0xff] %v1336_v12  ;;  %v1926_v39 = vadd.f32 %v1925_v38, %v1924_v13 }
 0x508   : > { %v1341_v14 = vadd.f32 %v1926_v39, %v3007_v43  ;;  %v1927_v15 = vpop.f32.mrb[30].mxu1 }
 0x509   : > { %v1928_v40 = vpop.f32.mrb[31].mxu1 }
 0x50a   : > { %1363 = vst [vmem:[%s2888_s9 + $0x70] sm:$0xff] %v1341_v14  ;;  %v1929_v41 = vadd.f32 %v1928_v40, %v1927_v15 }
 0x50c   : > { %v1346_v42 = vadd.f32 %v1929_v41, %v3007_v43 }
 0x50e   : > { %1364 = vst [vmem:[%s2888_s9 + $0x78] sm:$0xff] %v1346_v42 }
 0x50f PF: > { %s3163_s11 = sld [smem:[#allocation21_spill]]  ;;  %s3164_s1 = sld [smem:[#allocation20_spill]] }
 0x510   : > { %s1380_s15 = sshll.u32 %s2888_s9, 4  ;;  %s3165_s17 = sld [smem:[#allocation27_spill]]  ;;  %s3044_s15 = int_to_ptr.vmem [resolvable:$true] %s1380_s15 }
 0x511   : > { %s3053_s10 = scalar_lea.sflag [#allocation5], %s351_s28  ;;  %s2339_s27 = scalar_lea.vmem %s3044_s15, 2048 }
 0x512   : > { %p2340_p1 = scmp.ne.s32.totalorder %s3044_s15, %s2339_s27  ;;  %p3166_p9 = scmp.ne.s32.totalorder %s3151_s24, 0 }
 0x513   : > { %s2485_s9 = smov [#allocation14]  }
 0x514   : > { %p2341_p11 = pnand %p2340_p1, %p3166_p9 }
 0x515   : > { %s1373_s13 = smul.u32 %s3164_s1, %s3163_s11  ;;  %s2343_s11 = sshll.u32 %s2485_s9, 4  ;;  %s2344_s11 = int_to_ptr.vmem [resolvable:$false] %s2343_s11 }
 0x516   : > { %p2342_p12 = pneg %p2341_p11  ;;  %s2345_s1 = scalar_lea.vmem %s2344_s11, 4096 }
 0x517   : > { %s1602_s2 = sshll.u32 %s1373_s13, 11  ;;  %p2346_p6 = scmp.lt.s32.totalorder %s3044_s15, %s2344_s11 }
 0x518   : > { %s3049_s0 = scalar_lea.hbm %s3165_s17, %s1602_s2  ;;  %p2347_p2 = scmp.lt.s32.totalorder %s2345_s1, %s2339_s27 }
 0x51a   : > { %p2348_p5 = por %p2347_p2, %p2346_p6 }
 0x51c   : > { %p2349_p0 = pnand %p2348_p5, %p2342_p12 }
 0x51e   : > { %2352 = shalt.err (!%p2349_p0)
}
 0x51f   : > { %s2353_s28 = scalar_lea.hbm %s3049_s0, 2048  ;;  %s2357_s6 = scalar_lea.hbm %s3165_s17, 4096 }
 0x520   : > { %p2354_p4 = scmp.ne.s32.totalorder %s3049_s0, %s2353_s28  ;;  %p2358_p8 = scmp.lt.u32.totalorder %s3049_s0, %s3165_s17 }
 0x521   : > { %p2359_p7 = scmp.lt.u32.totalorder %s2357_s6, %s2353_s28  ;;  %p2361_p1 = scmp.lt.u32.totalorder %s2353_s28, %s3049_s0 }
 0x522   : > { %p2355_p10 = pnand %p2354_p4, %p3166_p9 }
 0x523   : > { %p2360_p13 = por %p2359_p7, %p2358_p8 }
 0x524   : > { %p2356_p3 = pneg %p2355_p10 }
 0x525   : > { %p2362_p11 = por %p2361_p1, %p2360_p13 }
 0x527   : > { %p2363_p12 = pnand %p2362_p11, %p2356_p3 }
 0x529   : > { %2366 = shalt.err (!%p2363_p12)
}
 0x52a   : > { %s2486_s27 = smov 128   ;;  %s2487_s11 = smov 8  }
 0x52b   : > { %2016 = dma.vmem_to_hbm [thread:$0]  (%p3166_p9), %s3044_s15, 2048, %s3049_s0, %s3053_s10, %s2486_s27, %s2486_s27, %s2487_s11  }
 0x52c PF: > { %p2053_p6 = scmp.ge.s32.totalorder %s2473_s7, 2  ;;  %s1395_s1 = sand.u32 1, %s2433_s21  }
 0x52d   : > { %p3167_p2 = scmp.ne.s32.totalorder %s3152_s19, 0  ;;  %s1396_s28 = scalar_lea.sflag [#allocation5], %s1395_s1 }
 0x52f   : > { %p2039_p5 = pnand %p2053_p6, %p3167_p2 }
 0x531   : > { %2428 = dma.done.wait (!%p2039_p5), %s1396_s28, 2048  }
 0x532   : > { %2430 = vsyncadd (!%p2039_p5), %s1396_s28, 4294965248  ;;  %s25_s7 = sadd.s32 1, %s2473_s7   ;;  %s3168_s21 = smov %s2437_s22 }
 0x533   : > { %p22_p0 = scmp.ge.s32.totalorder %s25_s7, 6   ;;  %s3169_s22 = smov %s2441_s23 }
 0x534   : > { %s3170_s23 = smov %s2783_s12  ;;  %s3171_s24 = smov %s2449_s25 }
 0x535   : > { %s3172_s25 = smov %s2453_s26  ;;  %s3173_s26 = smov %s2754_s16 }
 0x536   : > { %s3174_s27 = smov %s2465_s29  ;;  %s3175_s28 = smov %s2469_s30 }
 0x537   : > { %s3176_s29 = smov %s3179_s14  ;;  %s3177_s30 = smov %s3183_s8 }
 0x538   :  { %24 = sbr.rel (!%p22_p0) target bundleno = 17 (0x11), region = 120 }
 0x53f   :  { %1401 = vsyncpa [#allocation4], 1 }
 0x540   :  { %1403 = vsyncpa [#allocation4 + $0x1], 1 }
 0x541   :  { %1404 = vsyncpa [#allocation7], 1 }
 0x542   :  { %1405 = vsyncpa [#allocation10], 1 }
 0x543   :  { %1406 = vsyncpa [#allocation13], 1 }
 0x544   :  { %1407 = vsyncpa [#allocation5], 1 }
 0x545   :  { %1409 = vsyncpa [#allocation5 + $0x1], 1 }

</bundles_post_ra>
